<compile_context>
chip_gen: v7x
topology: tpu7x:2x2x1
jax: 0.10.0
libtpu: 0.0.40
codegen_flags: <defaults>
</compile_context>

<pallas_src>
import functools

import jax
import jax.numpy as jnp
from jax.experimental import pallas as pl
from jax.experimental.pallas import tpu as pltpu

# ---------------- model config (small, consistent with the module) ----------
VOCAB_SIZE = 128          # len(vocab)
D_MODEL = 32              # d_model
D_HIDDEN = 32             # d_hidden (must equal d_model for weight tying)
N_LAYERS = 2
BATCH = 2
SEQ = 8
SUBLANE = 8               # f32 sublane count -> pad batch to a multiple of 8

assert D_MODEL == D_HIDDEN, "cannot tie, check dims"
assert N_LAYERS == 2, "fused kernel is specialized for 2 LSTM layers"


# ---------------- fused Pallas kernel ---------------------------------------
def _fused_lstm_kernel(T, B, H, V,
                       ids_ref, emb_gates_ref, bias_ref, w_rec_ref,
                       embT_ref, bout_ref, state_in_ref,
                       logits_ref, state_out_ref, x1_ref):
    """Embedding + 2 wavefront-interleaved LSTM layers + tied head.

    ids_ref:       (T*B, 1) int32, time-major token ids (row r = t*B + b)
    emb_gates_ref: (V, 8H)  emb_w @ W_ih0 (gate order [i,f,o,g]), zero-padded
                            on the layer-1 half
    bias_ref:      (1, 8H)  [b_ih0+b_hh0 | b_ih1+b_hh1] (reordered)
    w_rec_ref:     (2H, 8H) [[Whh0, Wih1], [0, Whh1]] (pre-transposed/reordered)
    embT_ref:      (H, V)   tied head weight (embedding transposed)
    bout_ref:      (1, V)   head bias
    state_in_ref:  (B, 4H)  packed initial state [h_l0 | c_l0 | h_l1 | c_l1]
    outputs:       logits (T*B, V), packed final state (B, 4H)
    scratch:       x1_ref (T*B, H) layer-1 outputs
    """
    H2, H3, H4 = 2 * H, 3 * H, 4 * H

    # ---- embedding fused with layer-0 input projection (one-hot matmul) ----
    ids = ids_ref[...]                                            # (T*B, 1)
    lanes = jax.lax.broadcasted_iota(jnp.int32, (T * B, V), 1)
    one_hot = (lanes == ids).astype(jnp.float32)                  # (T*B, V)
    bias = bias_ref[...]                                          # (1, 8H)
    # cols [:4H] = x_t @ Wih0 + b0   ;   cols [4H:] = b1 (broadcast)
    gx_all = jnp.dot(one_hot, emb_gates_ref[...],
                     preferred_element_type=jnp.float32) + bias   # (T*B, 8H)
    # TODO(synk): dropout on embeddings / between layers is identity here.

    state = state_in_ref[...]                                     # (B, 4H)
    h0, c0 = state[:, 0:H], state[:, H:H2]
    h1, c1 = state[:, H2:H3], state[:, H3:H4]

    w_rec = w_rec_ref[...]                                        # (2H, 8H)

    def lstm_step(gates, c):
        # gate column order [i | f | o | g]: one wide sigmoid + one tanh.
        sig = jax.nn.sigmoid(gates[:, :H3])                       # (B, 3H)
        g = jnp.tanh(gates[:, H3:])                               # (B, H)
        c_new = sig[:, H:H2] * c + sig[:, :H] * g
        h_new = sig[:, H2:H3] * jnp.tanh(c_new)
        return h_new, c_new

    # ---- wavefront over time: iteration s = layer-0 step s + layer-1 step s-1
    for s in range(T + 1):                                        # fully unrolled
        lhs = jnp.concatenate([h0, h1], axis=1)                   # (B, 2H)
        rec = jnp.dot(lhs, w_rec,
                      preferred_element_type=jnp.float32)         # (B, 8H)
        if s < T:
            gates = rec + gx_all[s * B:(s + 1) * B, :]
            h0, c0 = lstm_step(gates[:, :H4], c0)                 # layer-0 step s
        else:
            gates = rec + bias                                    # only layer-1 half used
        if s >= 1:
            h1, c1 = lstm_step(gates[:, H4:], c1)                 # layer-1 step s-1
            x1_ref[(s - 1) * B:s * B, :] = h1

    # ---- tied output head: one batched matmul, one lane-dense store --------
    logits_ref[...] = (jnp.dot(x1_ref[...], embT_ref[...],
                               preferred_element_type=jnp.float32)
                       + bout_ref[...])
    # ---- packed final state: single (B, 4H) = (8,128) unmasked store -------
    state_out_ref[...] = jnp.concatenate([h0, c0, h1, c1], axis=1)


def fused_lstm_call(ids, emb_gates, bias_full, w_rec, emb_wT, b_out, state_in):
    TB = ids.shape[0]
    BP, H4 = state_in.shape
    H = H4 // 4
    V = emb_wT.shape[1]
    T = TB // BP
    kernel = functools.partial(_fused_lstm_kernel, T, BP, H, V)

    def full_spec(shape):
        n = len(shape)
        return pl.BlockSpec(shape, lambda i, _n=n: (0,) * _n)

    return pl.pallas_call(
        kernel,
        out_shape=(jax.ShapeDtypeStruct((TB, V), jnp.float32),
                   jax.ShapeDtypeStruct((BP, H4), jnp.float32)),
        grid=(1,),
        in_specs=[full_spec(ids.shape),
                  full_spec(emb_gates.shape),
                  full_spec(bias_full.shape),
                  full_spec(w_rec.shape),
                  full_spec(emb_wT.shape),
                  full_spec(b_out.shape),
                  full_spec(state_in.shape)],
        out_specs=(full_spec((TB, V)),
                   full_spec((BP, H4))),
        scratch_shapes=[pltpu.VMEM((TB, H), jnp.float32)],
        compiler_params=pltpu.CompilerParams(
            dimension_semantics=("arbitrary",)),
    )(ids, emb_gates, bias_full, w_rec, emb_wT, b_out, state_in)


# ---------------- parameter prep (done ONCE, outside the jitted forward) ----
def prepare_kernel_params(params):
    """Pre-transpose / pre-fuse weights into kernel-ready layout."""
    H = D_HIDDEN
    # PyTorch gate order [i, f, g, o] -> kernel order [i, f, o, g].
    perm = jnp.concatenate([jnp.arange(0, H), jnp.arange(H, 2 * H),
                            jnp.arange(3 * H, 4 * H), jnp.arange(2 * H, 3 * H)])
    emb_w = params["emb_w"]                                      # (V, D)

    def reord(w):            # (4H, d_in) -> (d_in, 4H), columns in [i,f,o,g]
        return jnp.transpose(w[perm, :])

    wih0 = reord(params["w_ih_0"])                               # (D, 4H)
    whh0 = reord(params["w_hh_0"])                               # (H, 4H)
    wih1 = reord(params["w_ih_1"])                               # (H, 4H)
    whh1 = reord(params["w_hh_1"])                               # (H, 4H)
    b0 = (params["b_ih_0"] + params["b_hh_0"])[perm]
    b1 = (params["b_ih_1"] + params["b_hh_1"])[perm]

    # Embedding fused with the layer-0 input projection; zero-pad the layer-1
    # half so one (T*B, V) x (V, 8H) one-hot matmul yields all additive terms.
    emb_gates0 = jnp.dot(emb_w, wih0,
                         precision=jax.lax.Precision.HIGHEST)    # (V, 4H)
    emb_gates = jnp.concatenate(
        [emb_gates0, jnp.zeros((VOCAB_SIZE, 4 * H), jnp.float32)], axis=1)

    bias_full = jnp.concatenate([b0, b1]).reshape(1, 8 * H)      # (1, 8H)

    # Merged recurrent weight: [h0 | h1] @ w_rec
    #   = [ h0 @ Whh0  |  h0 @ Wih1 + h1 @ Whh1 ]
    w_rec = jnp.concatenate([
        jnp.concatenate([whh0, wih1], axis=1),                   # (H, 8H)
        jnp.concatenate([jnp.zeros((H, 4 * H), jnp.float32), whh1], axis=1),
    ], axis=0)                                                   # (2H, 8H)

    return {
        "emb_gates": emb_gates,                                  # (V, 8H)
        "bias_full": bias_full,                                  # (1, 8H)
        "w_rec": w_rec,                                          # (2H, 8H)
        "emb_wT": jnp.transpose(emb_w),                          # (D, V) tied head
        "b_out": params["b_out"].reshape(1, -1),                 # (1, V)
    }


# ---------------- full forward (mirrors LSTM.forward) ------------------------
@jax.jit
def lstm_forward(src, h0, c0, kp):
    """src: int32 (B, T); (h0, c0): (n_layers, B, H) each.
    Returns [preds (B, T, vocab), (h_T, c_T)]."""
    B, T = src.shape
    _, _, H = h0.shape
    V = kp["emb_wT"].shape[1]

    # Pad batch to the f32 sublane count so every vreg row is dense.
    BP = ((B + SUBLANE - 1) // SUBLANE) * SUBLANE
    pad = BP - B
    src_p = jnp.pad(src, ((0, pad), (0, 0)))
    h0_p = jnp.pad(h0, ((0, 0), (0, pad), (0, 0)))
    c0_p = jnp.pad(c0, ((0, 0), (0, pad), (0, 0)))

    # Time-major token id column: row r = t*BP + b.
    ids = jnp.transpose(src_p).reshape(T * BP, 1).astype(jnp.int32)

    # Packed initial state [h_l0 | c_l0 | h_l1 | c_l1]: one (BP, 4H) tile.
    state_in = jnp.concatenate([h0_p[0], c0_p[0], h0_p[1], c0_p[1]], axis=1)

    logits, state_out = fused_lstm_call(
        ids, kp["emb_gates"], kp["bias_full"], kp["w_rec"],
        kp["emb_wT"], kp["b_out"], state_in)

    preds = jnp.transpose(logits.reshape(T, BP, V), (1, 0, 2))[:B]   # (B, T, V)
    hT = jnp.stack([state_out[:B, 0:H], state_out[:B, 2 * H:3 * H]], axis=0)
    cT = jnp.stack([state_out[:B, H:2 * H], state_out[:B, 3 * H:4 * H]], axis=0)
    return preds, (hT, cT)


# ---------------- pure-JAX reference for verification -----------------------
def reference_forward(src, h0, c0, params):
    emb_w = params["emb_w"]
    x = jnp.take(emb_w, src, axis=0)             # (B, T, D)
    H = D_HIDDEN
    h_finals, c_finals = [], []
    for layer in range(N_LAYERS):
        wih = params[f"w_ih_{layer}"]
        whh = params[f"w_hh_{layer}"]
        b = params[f"b_ih_{layer}"] + params[f"b_hh_{layer}"]
        h = h0[layer]
        c = c0[layer]
        hs = []
        for t in range(x.shape[1]):
            gates = x[:, t] @ wih.T + h @ whh.T + b
            i_g = jax.nn.sigmoid(gates[:, 0 * H:1 * H])
            f_g = jax.nn.sigmoid(gates[:, 1 * H:2 * H])
            g_g = jnp.tanh(gates[:, 2 * H:3 * H])
            o_g = jax.nn.sigmoid(gates[:, 3 * H:4 * H])
            c = f_g * c + i_g * g_g
            h = o_g * jnp.tanh(c)
            hs.append(h)
        x = jnp.stack(hs, axis=1)
        h_finals.append(h)
        c_finals.append(c)
    preds = x @ emb_w.T + params["b_out"]
    return preds, (jnp.stack(h_finals, 0), jnp.stack(c_finals, 0))


# ---------------- deterministic parameter init -------------------------------
def init_params(key):
    k = 1.0 / jnp.sqrt(jnp.float32(D_HIDDEN))
    keys = jax.random.split(key, 2 + 4 * N_LAYERS)
    params = {
        # tied: embeds.weight is logprobs.weight  -> single (V, D) matrix
        "emb_w": jax.random.uniform(keys[0], (VOCAB_SIZE, D_MODEL),
                                    jnp.float32, -k, k),
        "b_out": jax.random.uniform(keys[1], (VOCAB_SIZE,),
                                    jnp.float32, -k, k),
    }
    for layer in range(N_LAYERS):
        d_in = D_MODEL if layer == 0 else D_HIDDEN
        base = 2 + 4 * layer
        params[f"w_ih_{layer}"] = jax.random.uniform(
            keys[base + 0], (4 * D_HIDDEN, d_in), jnp.float32, -k, k)
        params[f"w_hh_{layer}"] = jax.random.uniform(
            keys[base + 1], (4 * D_HIDDEN, D_HIDDEN), jnp.float32, -k, k)
        params[f"b_ih_{layer}"] = jax.random.uniform(
            keys[base + 2], (4 * D_HIDDEN,), jnp.float32, -k, k)
        params[f"b_hh_{layer}"] = jax.random.uniform(
            keys[base + 3], (4 * D_HIDDEN,), jnp.float32, -k, k)
    return params


if __name__ == "__main__":
    key = jax.random.PRNGKey(0)
    k_param, k_src = jax.random.split(key)

    params = init_params(k_param)
    kparams = prepare_kernel_params(params)     # one-time weight relayout/fusion
    src = jax.random.randint(k_src, (BATCH, SEQ), 0, VOCAB_SIZE, jnp.int32)

    # init_hidden equivalent
    h0 = jnp.zeros((N_LAYERS, BATCH, D_HIDDEN), jnp.float32)
    c0 = jnp.zeros((N_LAYERS, BATCH, D_HIDDEN), jnp.float32)

    preds, (hT, cT) = lstm_forward(src, h0, c0, kparams)
    jax.block_until_ready((preds, hT, cT))

    # lightweight correctness check against a pure-JAX reference
    ref_preds, (ref_h, ref_c) = reference_forward(src, h0, c0, params)
    assert preds.shape == (BATCH, SEQ, VOCAB_SIZE)
    assert hT.shape == (N_LAYERS, BATCH, D_HIDDEN)
    assert cT.shape == (N_LAYERS, BATCH, D_HIDDEN)
    assert jnp.allclose(preds, ref_preds, atol=1e-4, rtol=1e-4)
    assert jnp.allclose(hT, ref_h, atol=1e-4, rtol=1e-4)
    assert jnp.allclose(cT, ref_c, atol=1e-4, rtol=1e-4)

    print("KERNEL_OK")
</pallas_src>

<mosaic_0001>
module attributes {stable_mosaic.version = 11 : i64} {
  func.func @_fused_lstm_kernel(%arg0: i32, %arg1: memref<64x1xi32, #tpu.memory_space<vmem>>, %arg2: memref<128x256xf32, #tpu.memory_space<vmem>>, %arg3: memref<1x256xf32, #tpu.memory_space<vmem>>, %arg4: memref<64x256xf32, #tpu.memory_space<vmem>>, %arg5: memref<32x128xf32, #tpu.memory_space<vmem>>, %arg6: memref<1x128xf32, #tpu.memory_space<vmem>>, %arg7: memref<8x128xf32, #tpu.memory_space<vmem>>, %arg8: memref<64x128xf32, #tpu.memory_space<vmem>>, %arg9: memref<8x128xf32, #tpu.memory_space<vmem>>, %arg10: memref<64x32xf32, #tpu.memory_space<vmem>>) attributes {dimension_semantics = [#tpu.dimension_semantics<arbitrary>], iteration_bounds = array<i64: 1>, scalar_prefetch = 0 : i64, scratch_operands = 1 : i64, tpu.core_type = #tpu.core_type<tc>, window_params = [{pipeline_mode = #tpu.pipeline_mode<synchronous>, transform_indices = @transform_0, window_bounds = array<i64: 64, 1>}, {pipeline_mode = #tpu.pipeline_mode<synchronous>, transform_indices = @transform_1, window_bounds = array<i64: 128, 256>}, {pipeline_mode = #tpu.pipeline_mode<synchronous>, transform_indices = @transform_2, window_bounds = array<i64: 1, 256>}, {pipeline_mode = #tpu.pipeline_mode<synchronous>, transform_indices = @transform_3, window_bounds = array<i64: 64, 256>}, {pipeline_mode = #tpu.pipeline_mode<synchronous>, transform_indices = @transform_4, window_bounds = array<i64: 32, 128>}, {pipeline_mode = #tpu.pipeline_mode<synchronous>, transform_indices = @transform_5, window_bounds = array<i64: 1, 128>}, {pipeline_mode = #tpu.pipeline_mode<synchronous>, transform_indices = @transform_6, window_bounds = array<i64: 8, 128>}, {pipeline_mode = #tpu.pipeline_mode<synchronous>, transform_indices = @transform_7, window_bounds = array<i64: 64, 128>}, {pipeline_mode = #tpu.pipeline_mode<synchronous>, transform_indices = @transform_8, window_bounds = array<i64: 8, 128>}]} {
    %c0 = arith.constant 0 : index
    %c0_0 = arith.constant 0 : index
    %0 = vector.load %arg1[%c0, %c0_0] : memref<64x1xi32, #tpu.memory_space<vmem>>, vector<64x1xi32>
    %1 = tpu.iota {dimensions = array<i32: 1>} : vector<64x128xi32>
    %2 = vector.broadcast %0 : vector<64x1xi32> to vector<64x128xi32>
    %3 = arith.cmpi eq, %1, %2 : vector<64x128xi32>
    %4 = arith.extui %3 : vector<64x128xi1> to vector<64x128xi32>
    %5 = arith.sitofp %4 : vector<64x128xi32> to vector<64x128xf32>
    %c0_1 = arith.constant 0 : index
    %c0_2 = arith.constant 0 : index
    %6 = vector.load %arg3[%c0_1, %c0_2] : memref<1x256xf32, #tpu.memory_space<vmem>>, vector<1x256xf32>
    %c0_3 = arith.constant 0 : index
    %c0_4 = arith.constant 0 : index
    %7 = vector.load %arg2[%c0_3, %c0_4] : memref<128x256xf32, #tpu.memory_space<vmem>>, vector<128x256xf32>
    %cst = arith.constant dense<0.000000e+00> : vector<64x256xf32>
    %8 = tpu.matmul %5, %7, %cst {dimension_numbers = #tpu.dot_dimension_numbers<[1], [0], [0], [1], [0, 0, 1, 1], [], []>} : vector<64x128xf32>, vector<128x256xf32>, vector<64x256xf32> -> vector<64x256xf32>
    %9 = vector.broadcast %6 : vector<1x256xf32> to vector<64x256xf32>
    %10 = arith.addf %8, %9 : vector<64x256xf32>
    %c0_5 = arith.constant 0 : index
    %c0_6 = arith.constant 0 : index
    %11 = vector.load %arg7[%c0_5, %c0_6] : memref<8x128xf32, #tpu.memory_space<vmem>>, vector<8x128xf32>
    %12 = vector.extract_strided_slice %11 {offsets = [0, 0], sizes = [8, 32], strides = [1, 1]} : vector<8x128xf32> to vector<8x32xf32>
    %13 = vector.extract_strided_slice %11 {offsets = [0, 32], sizes = [8, 32], strides = [1, 1]} : vector<8x128xf32> to vector<8x32xf32>
    %14 = vector.extract_strided_slice %11 {offsets = [0, 64], sizes = [8, 32], strides = [1, 1]} : vector<8x128xf32> to vector<8x32xf32>
    %15 = vector.extract_strided_slice %11 {offsets = [0, 96], sizes = [8, 32], strides = [1, 1]} : vector<8x128xf32> to vector<8x32xf32>
    %c0_7 = arith.constant 0 : index
    %c0_8 = arith.constant 0 : index
    %16 = vector.load %arg4[%c0_7, %c0_8] : memref<64x256xf32, #tpu.memory_space<vmem>>, vector<64x256xf32>
    %17 = tpu.concatenate %12, %14 in 1 : vector<8x32xf32>, vector<8x32xf32> -> vector<8x64xf32>
    %cst_9 = arith.constant dense<0.000000e+00> : vector<8x256xf32>
    %18 = tpu.matmul %17, %16, %cst_9 {dimension_numbers = #tpu.dot_dimension_numbers<[1], [0], [0], [1], [0, 0, 1, 1], [], []>} : vector<8x64xf32>, vector<64x256xf32>, vector<8x256xf32> -> vector<8x256xf32>
    %19 = vector.extract_strided_slice %10 {offsets = [0, 0], sizes = [8, 256], strides = [1, 1]} : vector<64x256xf32> to vector<8x256xf32>
    %20 = arith.addf %18, %19 : vector<8x256xf32>
    %21 = vector.extract_strided_slice %20 {offsets = [0, 0], sizes = [8, 128], strides = [1, 1]} : vector<8x256xf32> to vector<8x128xf32>
    %22 = vector.extract_strided_slice %21 {offsets = [0, 0], sizes = [8, 96], strides = [1, 1]} : vector<8x128xf32> to vector<8x96xf32>
    %23 = arith.negf %22 : vector<8x96xf32>
    %24 = math.exp %23 : vector<8x96xf32>
    %cst_10 = arith.constant 1.000000e+00 : f32
    %25 = vector.broadcast %cst_10 : f32 to vector<8x96xf32>
    %26 = arith.addf %25, %24 : vector<8x96xf32>
    %27 = arith.divf %25, %26 : vector<8x96xf32>
    %28 = vector.extract_strided_slice %21 {offsets = [0, 96], sizes = [8, 32], strides = [1, 1]} : vector<8x128xf32> to vector<8x32xf32>
    %29 = math.tanh %28 : vector<8x32xf32>
    %30 = vector.extract_strided_slice %27 {offsets = [0, 32], sizes = [8, 32], strides = [1, 1]} : vector<8x96xf32> to vector<8x32xf32>
    %31 = arith.mulf %30, %13 : vector<8x32xf32>
    %32 = vector.extract_strided_slice %27 {offsets = [0, 0], sizes = [8, 32], strides = [1, 1]} : vector<8x96xf32> to vector<8x32xf32>
    %33 = arith.mulf %32, %29 : vector<8x32xf32>
    %34 = arith.addf %31, %33 : vector<8x32xf32>
    %35 = vector.extract_strided_slice %27 {offsets = [0, 64], sizes = [8, 32], strides = [1, 1]} : vector<8x96xf32> to vector<8x32xf32>
    %36 = math.tanh %34 : vector<8x32xf32>
    %37 = arith.mulf %35, %36 : vector<8x32xf32>
    %38 = tpu.concatenate %37, %14 in 1 : vector<8x32xf32>, vector<8x32xf32> -> vector<8x64xf32>
    %cst_11 = arith.constant dense<0.000000e+00> : vector<8x256xf32>
    %39 = tpu.matmul %38, %16, %cst_11 {dimension_numbers = #tpu.dot_dimension_numbers<[1], [0], [0], [1], [0, 0, 1, 1], [], []>} : vector<8x64xf32>, vector<64x256xf32>, vector<8x256xf32> -> vector<8x256xf32>
    %40 = vector.extract_strided_slice %10 {offsets = [8, 0], sizes = [8, 256], strides = [1, 1]} : vector<64x256xf32> to vector<8x256xf32>
    %41 = arith.addf %39, %40 : vector<8x256xf32>
    %42 = vector.extract_strided_slice %41 {offsets = [0, 0], sizes = [8, 128], strides = [1, 1]} : vector<8x256xf32> to vector<8x128xf32>
    %43 = vector.extract_strided_slice %42 {offsets = [0, 0], sizes = [8, 96], strides = [1, 1]} : vector<8x128xf32> to vector<8x96xf32>
    %44 = arith.negf %43 : vector<8x96xf32>
    %45 = math.exp %44 : vector<8x96xf32>
    %cst_12 = arith.constant 1.000000e+00 : f32
    %46 = vector.broadcast %cst_12 : f32 to vector<8x96xf32>
    %47 = arith.addf %46, %45 : vector<8x96xf32>
    %48 = arith.divf %46, %47 : vector<8x96xf32>
    %49 = vector.extract_strided_slice %42 {offsets = [0, 96], sizes = [8, 32], strides = [1, 1]} : vector<8x128xf32> to vector<8x32xf32>
    %50 = math.tanh %49 : vector<8x32xf32>
    %51 = vector.extract_strided_slice %48 {offsets = [0, 32], sizes = [8, 32], strides = [1, 1]} : vector<8x96xf32> to vector<8x32xf32>
    %52 = arith.mulf %51, %34 : vector<8x32xf32>
    %53 = vector.extract_strided_slice %48 {offsets = [0, 0], sizes = [8, 32], strides = [1, 1]} : vector<8x96xf32> to vector<8x32xf32>
    %54 = arith.mulf %53, %50 : vector<8x32xf32>
    %55 = arith.addf %52, %54 : vector<8x32xf32>
    %56 = vector.extract_strided_slice %48 {offsets = [0, 64], sizes = [8, 32], strides = [1, 1]} : vector<8x96xf32> to vector<8x32xf32>
    %57 = math.tanh %55 : vector<8x32xf32>
    %58 = arith.mulf %56, %57 : vector<8x32xf32>
    %59 = vector.extract_strided_slice %41 {offsets = [0, 128], sizes = [8, 128], strides = [1, 1]} : vector<8x256xf32> to vector<8x128xf32>
    %60 = vector.extract_strided_slice %59 {offsets = [0, 0], sizes = [8, 96], strides = [1, 1]} : vector<8x128xf32> to vector<8x96xf32>
    %61 = arith.negf %60 : vector<8x96xf32>
    %62 = math.exp %61 : vector<8x96xf32>
    %cst_13 = arith.constant 1.000000e+00 : f32
    %63 = vector.broadcast %cst_13 : f32 to vector<8x96xf32>
    %64 = arith.addf %63, %62 : vector<8x96xf32>
    %65 = arith.divf %63, %64 : vector<8x96xf32>
    %66 = vector.extract_strided_slice %59 {offsets = [0, 96], sizes = [8, 32], strides = [1, 1]} : vector<8x128xf32> to vector<8x32xf32>
    %67 = math.tanh %66 : vector<8x32xf32>
    %68 = vector.extract_strided_slice %65 {offsets = [0, 32], sizes = [8, 32], strides = [1, 1]} : vector<8x96xf32> to vector<8x32xf32>
    %69 = arith.mulf %68, %15 : vector<8x32xf32>
    %70 = vector.extract_strided_slice %65 {offsets = [0, 0], sizes = [8, 32], strides = [1, 1]} : vector<8x96xf32> to vector<8x32xf32>
    %71 = arith.mulf %70, %67 : vector<8x32xf32>
    %72 = arith.addf %69, %71 : vector<8x32xf32>
    %73 = vector.extract_strided_slice %65 {offsets = [0, 64], sizes = [8, 32], strides = [1, 1]} : vector<8x96xf32> to vector<8x32xf32>
    %74 = math.tanh %72 : vector<8x32xf32>
    %75 = arith.mulf %73, %74 : vector<8x32xf32>
    %c0_14 = arith.constant 0 : index
    %c0_15 = arith.constant 0 : index
    %76 = vector.load %arg10[%c0_14, %c0_15] : memref<64x32xf32, #tpu.memory_space<vmem>>, vector<8x32xf32>
    tpu.vector_store %arg10[%c0_14, %c0_15], %75 {strides = array<i32>} : memref<64x32xf32, #tpu.memory_space<vmem>>, vector<8x32xf32>,
    %77 = tpu.concatenate %58, %75 in 1 : vector<8x32xf32>, vector<8x32xf32> -> vector<8x64xf32>
    %cst_16 = arith.constant dense<0.000000e+00> : vector<8x256xf32>
    %78 = tpu.matmul %77, %16, %cst_16 {dimension_numbers = #tpu.dot_dimension_numbers<[1], [0], [0], [1], [0, 0, 1, 1], [], []>} : vector<8x64xf32>, vector<64x256xf32>, vector<8x256xf32> -> vector<8x256xf32>
    %79 = vector.extract_strided_slice %10 {offsets = [16, 0], sizes = [8, 256], strides = [1, 1]} : vector<64x256xf32> to vector<8x256xf32>
    %80 = arith.addf %78, %79 : vector<8x256xf32>
    %81 = vector.extract_strided_slice %80 {offsets = [0, 0], sizes = [8, 128], strides = [1, 1]} : vector<8x256xf32> to vector<8x128xf32>
    %82 = vector.extract_strided_slice %81 {offsets = [0, 0], sizes = [8, 96], strides = [1, 1]} : vector<8x128xf32> to vector<8x96xf32>
    %83 = arith.negf %82 : vector<8x96xf32>
    %84 = math.exp %83 : vector<8x96xf32>
    %cst_17 = arith.constant 1.000000e+00 : f32
    %85 = vector.broadcast %cst_17 : f32 to vector<8x96xf32>
    %86 = arith.addf %85, %84 : vector<8x96xf32>
    %87 = arith.divf %85, %86 : vector<8x96xf32>
    %88 = vector.extract_strided_slice %81 {offsets = [0, 96], sizes = [8, 32], strides = [1, 1]} : vector<8x128xf32> to vector<8x32xf32>
    %89 = math.tanh %88 : vector<8x32xf32>
    %90 = vector.extract_strided_slice %87 {offsets = [0, 32], sizes = [8, 32], strides = [1, 1]} : vector<8x96xf32> to vector<8x32xf32>
    %91 = arith.mulf %90, %55 : vector<8x32xf32>
    %92 = vector.extract_strided_slice %87 {offsets = [0, 0], sizes = [8, 32], strides = [1, 1]} : vector<8x96xf32> to vector<8x32xf32>
    %93 = arith.mulf %92, %89 : vector<8x32xf32>
    %94 = arith.addf %91, %93 : vector<8x32xf32>
    %95 = vector.extract_strided_slice %87 {offsets = [0, 64], sizes = [8, 32], strides = [1, 1]} : vector<8x96xf32> to vector<8x32xf32>
    %96 = math.tanh %94 : vector<8x32xf32>
    %97 = arith.mulf %95, %96 : vector<8x32xf32>
    %98 = vector.extract_strided_slice %80 {offsets = [0, 128], sizes = [8, 128], strides = [1, 1]} : vector<8x256xf32> to vector<8x128xf32>
    %99 = vector.extract_strided_slice %98 {offsets = [0, 0], sizes = [8, 96], strides = [1, 1]} : vector<8x128xf32> to vector<8x96xf32>
    %100 = arith.negf %99 : vector<8x96xf32>
    %101 = math.exp %100 : vector<8x96xf32>
    %cst_18 = arith.constant 1.000000e+00 : f32
    %102 = vector.broadcast %cst_18 : f32 to vector<8x96xf32>
    %103 = arith.addf %102, %101 : vector<8x96xf32>
    %104 = arith.divf %102, %103 : vector<8x96xf32>
    %105 = vector.extract_strided_slice %98 {offsets = [0, 96], sizes = [8, 32], strides = [1, 1]} : vector<8x128xf32> to vector<8x32xf32>
    %106 = math.tanh %105 : vector<8x32xf32>
    %107 = vector.extract_strided_slice %104 {offsets = [0, 32], sizes = [8, 32], strides = [1, 1]} : vector<8x96xf32> to vector<8x32xf32>
    %108 = arith.mulf %107, %72 : vector<8x32xf32>
    %109 = vector.extract_strided_slice %104 {offsets = [0, 0], sizes = [8, 32], strides = [1, 1]} : vector<8x96xf32> to vector<8x32xf32>
    %110 = arith.mulf %109, %106 : vector<8x32xf32>
    %111 = arith.addf %108, %110 : vector<8x32xf32>
    %112 = vector.extract_strided_slice %104 {offsets = [0, 64], sizes = [8, 32], strides = [1, 1]} : vector<8x96xf32> to vector<8x32xf32>
    %113 = math.tanh %111 : vector<8x32xf32>
    %114 = arith.mulf %112, %113 : vector<8x32xf32>
    %c8 = arith.constant 8 : index
    %c0_19 = arith.constant 0 : index
    %115 = vector.load %arg10[%c8, %c0_19] : memref<64x32xf32, #tpu.memory_space<vmem>>, vector<8x32xf32>
    tpu.vector_store %arg10[%c8, %c0_19], %114 {strides = array<i32>} : memref<64x32xf32, #tpu.memory_space<vmem>>, vector<8x32xf32>,
    %116 = tpu.concatenate %97, %114 in 1 : vector<8x32xf32>, vector<8x32xf32> -> vector<8x64xf32>
    %cst_20 = arith.constant dense<0.000000e+00> : vector<8x256xf32>
    %117 = tpu.matmul %116, %16, %cst_20 {dimension_numbers = #tpu.dot_dimension_numbers<[1], [0], [0], [1], [0, 0, 1, 1], [], []>} : vector<8x64xf32>, vector<64x256xf32>, vector<8x256xf32> -> vector<8x256xf32>
    %118 = vector.extract_strided_slice %10 {offsets = [24, 0], sizes = [8, 256], strides = [1, 1]} : vector<64x256xf32> to vector<8x256xf32>
    %119 = arith.addf %117, %118 : vector<8x256xf32>
    %120 = vector.extract_strided_slice %119 {offsets = [0, 0], sizes = [8, 128], strides = [1, 1]} : vector<8x256xf32> to vector<8x128xf32>
    %121 = vector.extract_strided_slice %120 {offsets = [0, 0], sizes = [8, 96], strides = [1, 1]} : vector<8x128xf32> to vector<8x96xf32>
    %122 = arith.negf %121 : vector<8x96xf32>
    %123 = math.exp %122 : vector<8x96xf32>
    %cst_21 = arith.constant 1.000000e+00 : f32
    %124 = vector.broadcast %cst_21 : f32 to vector<8x96xf32>
    %125 = arith.addf %124, %123 : vector<8x96xf32>
    %126 = arith.divf %124, %125 : vector<8x96xf32>
    %127 = vector.extract_strided_slice %120 {offsets = [0, 96], sizes = [8, 32], strides = [1, 1]} : vector<8x128xf32> to vector<8x32xf32>
    %128 = math.tanh %127 : vector<8x32xf32>
    %129 = vector.extract_strided_slice %126 {offsets = [0, 32], sizes = [8, 32], strides = [1, 1]} : vector<8x96xf32> to vector<8x32xf32>
    %130 = arith.mulf %129, %94 : vector<8x32xf32>
    %131 = vector.extract_strided_slice %126 {offsets = [0, 0], sizes = [8, 32], strides = [1, 1]} : vector<8x96xf32> to vector<8x32xf32>
    %132 = arith.mulf %131, %128 : vector<8x32xf32>
    %133 = arith.addf %130, %132 : vector<8x32xf32>
    %134 = vector.extract_strided_slice %126 {offsets = [0, 64], sizes = [8, 32], strides = [1, 1]} : vector<8x96xf32> to vector<8x32xf32>
    %135 = math.tanh %133 : vector<8x32xf32>
    %136 = arith.mulf %134, %135 : vector<8x32xf32>
    %137 = vector.extract_strided_slice %119 {offsets = [0, 128], sizes = [8, 128], strides = [1, 1]} : vector<8x256xf32> to vector<8x128xf32>
    %138 = vector.extract_strided_slice %137 {offsets = [0, 0], sizes = [8, 96], strides = [1, 1]} : vector<8x128xf32> to vector<8x96xf32>
    %139 = arith.negf %138 : vector<8x96xf32>
    %140 = math.exp %139 : vector<8x96xf32>
    %cst_22 = arith.constant 1.000000e+00 : f32
    %141 = vector.broadcast %cst_22 : f32 to vector<8x96xf32>
    %142 = arith.addf %141, %140 : vector<8x96xf32>
    %143 = arith.divf %141, %142 : vector<8x96xf32>
    %144 = vector.extract_strided_slice %137 {offsets = [0, 96], sizes = [8, 32], strides = [1, 1]} : vector<8x128xf32> to vector<8x32xf32>
    %145 = math.tanh %144 : vector<8x32xf32>
    %146 = vector.extract_strided_slice %143 {offsets = [0, 32], sizes = [8, 32], strides = [1, 1]} : vector<8x96xf32> to vector<8x32xf32>
    %147 = arith.mulf %146, %111 : vector<8x32xf32>
    %148 = vector.extract_strided_slice %143 {offsets = [0, 0], sizes = [8, 32], strides = [1, 1]} : vector<8x96xf32> to vector<8x32xf32>
    %149 = arith.mulf %148, %145 : vector<8x32xf32>
    %150 = arith.addf %147, %149 : vector<8x32xf32>
    %151 = vector.extract_strided_slice %143 {offsets = [0, 64], sizes = [8, 32], strides = [1, 1]} : vector<8x96xf32> to vector<8x32xf32>
    %152 = math.tanh %150 : vector<8x32xf32>
    %153 = arith.mulf %151, %152 : vector<8x32xf32>
    %c16 = arith.constant 16 : index
    %c0_23 = arith.constant 0 : index
    %154 = vector.load %arg10[%c16, %c0_23] : memref<64x32xf32, #tpu.memory_space<vmem>>, vector<8x32xf32>
    tpu.vector_store %arg10[%c16, %c0_23], %153 {strides = array<i32>} : memref<64x32xf32, #tpu.memory_space<vmem>>, vector<8x32xf32>,
    %155 = tpu.concatenate %136, %153 in 1 : vector<8x32xf32>, vector<8x32xf32> -> vector<8x64xf32>
    %cst_24 = arith.constant dense<0.000000e+00> : vector<8x256xf32>
    %156 = tpu.matmul %155, %16, %cst_24 {dimension_numbers = #tpu.dot_dimension_numbers<[1], [0], [0], [1], [0, 0, 1, 1], [], []>} : vector<8x64xf32>, vector<64x256xf32>, vector<8x256xf32> -> vector<8x256xf32>
    %157 = vector.extract_strided_slice %10 {offsets = [32, 0], sizes = [8, 256], strides = [1, 1]} : vector<64x256xf32> to vector<8x256xf32>
    %158 = arith.addf %156, %157 : vector<8x256xf32>
    %159 = vector.extract_strided_slice %158 {offsets = [0, 0], sizes = [8, 128], strides = [1, 1]} : vector<8x256xf32> to vector<8x128xf32>
    %160 = vector.extract_strided_slice %159 {offsets = [0, 0], sizes = [8, 96], strides = [1, 1]} : vector<8x128xf32> to vector<8x96xf32>
    %161 = arith.negf %160 : vector<8x96xf32>
    %162 = math.exp %161 : vector<8x96xf32>
    %cst_25 = arith.constant 1.000000e+00 : f32
    %163 = vector.broadcast %cst_25 : f32 to vector<8x96xf32>
    %164 = arith.addf %163, %162 : vector<8x96xf32>
    %165 = arith.divf %163, %164 : vector<8x96xf32>
    %166 = vector.extract_strided_slice %159 {offsets = [0, 96], sizes = [8, 32], strides = [1, 1]} : vector<8x128xf32> to vector<8x32xf32>
    %167 = math.tanh %166 : vector<8x32xf32>
    %168 = vector.extract_strided_slice %165 {offsets = [0, 32], sizes = [8, 32], strides = [1, 1]} : vector<8x96xf32> to vector<8x32xf32>
    %169 = arith.mulf %168, %133 : vector<8x32xf32>
    %170 = vector.extract_strided_slice %165 {offsets = [0, 0], sizes = [8, 32], strides = [1, 1]} : vector<8x96xf32> to vector<8x32xf32>
    %171 = arith.mulf %170, %167 : vector<8x32xf32>
    %172 = arith.addf %169, %171 : vector<8x32xf32>
    %173 = vector.extract_strided_slice %165 {offsets = [0, 64], sizes = [8, 32], strides = [1, 1]} : vector<8x96xf32> to vector<8x32xf32>
    %174 = math.tanh %172 : vector<8x32xf32>
    %175 = arith.mulf %173, %174 : vector<8x32xf32>
    %176 = vector.extract_strided_slice %158 {offsets = [0, 128], sizes = [8, 128], strides = [1, 1]} : vector<8x256xf32> to vector<8x128xf32>
    %177 = vector.extract_strided_slice %176 {offsets = [0, 0], sizes = [8, 96], strides = [1, 1]} : vector<8x128xf32> to vector<8x96xf32>
    %178 = arith.negf %177 : vector<8x96xf32>
    %179 = math.exp %178 : vector<8x96xf32>
    %cst_26 = arith.constant 1.000000e+00 : f32
    %180 = vector.broadcast %cst_26 : f32 to vector<8x96xf32>
    %181 = arith.addf %180, %179 : vector<8x96xf32>
    %182 = arith.divf %180, %181 : vector<8x96xf32>
    %183 = vector.extract_strided_slice %176 {offsets = [0, 96], sizes = [8, 32], strides = [1, 1]} : vector<8x128xf32> to vector<8x32xf32>
    %184 = math.tanh %183 : vector<8x32xf32>
    %185 = vector.extract_strided_slice %182 {offsets = [0, 32], sizes = [8, 32], strides = [1, 1]} : vector<8x96xf32> to vector<8x32xf32>
    %186 = arith.mulf %185, %150 : vector<8x32xf32>
    %187 = vector.extract_strided_slice %182 {offsets = [0, 0], sizes = [8, 32], strides = [1, 1]} : vector<8x96xf32> to vector<8x32xf32>
    %188 = arith.mulf %187, %184 : vector<8x32xf32>
    %189 = arith.addf %186, %188 : vector<8x32xf32>
    %190 = vector.extract_strided_slice %182 {offsets = [0, 64], sizes = [8, 32], strides = [1, 1]} : vector<8x96xf32> to vector<8x32xf32>
    %191 = math.tanh %189 : vector<8x32xf32>
    %192 = arith.mulf %190, %191 : vector<8x32xf32>
    %c24 = arith.constant 24 : index
    %c0_27 = arith.constant 0 : index
    %193 = vector.load %arg10[%c24, %c0_27] : memref<64x32xf32, #tpu.memory_space<vmem>>, vector<8x32xf32>
    tpu.vector_store %arg10[%c24, %c0_27], %192 {strides = array<i32>} : memref<64x32xf32, #tpu.memory_space<vmem>>, vector<8x32xf32>,
    %194 = tpu.concatenate %175, %192 in 1 : vector<8x32xf32>, vector<8x32xf32> -> vector<8x64xf32>
    %cst_28 = arith.constant dense<0.000000e+00> : vector<8x256xf32>
    %195 = tpu.matmul %194, %16, %cst_28 {dimension_numbers = #tpu.dot_dimension_numbers<[1], [0], [0], [1], [0, 0, 1, 1], [], []>} : vector<8x64xf32>, vector<64x256xf32>, vector<8x256xf32> -> vector<8x256xf32>
    %196 = vector.extract_strided_slice %10 {offsets = [40, 0], sizes = [8, 256], strides = [1, 1]} : vector<64x256xf32> to vector<8x256xf32>
    %197 = arith.addf %195, %196 : vector<8x256xf32>
    %198 = vector.extract_strided_slice %197 {offsets = [0, 0], sizes = [8, 128], strides = [1, 1]} : vector<8x256xf32> to vector<8x128xf32>
    %199 = vector.extract_strided_slice %198 {offsets = [0, 0], sizes = [8, 96], strides = [1, 1]} : vector<8x128xf32> to vector<8x96xf32>
    %200 = arith.negf %199 : vector<8x96xf32>
    %201 = math.exp %200 : vector<8x96xf32>
    %cst_29 = arith.constant 1.000000e+00 : f32
    %202 = vector.broadcast %cst_29 : f32 to vector<8x96xf32>
    %203 = arith.addf %202, %201 : vector<8x96xf32>
    %204 = arith.divf %202, %203 : vector<8x96xf32>
    %205 = vector.extract_strided_slice %198 {offsets = [0, 96], sizes = [8, 32], strides = [1, 1]} : vector<8x128xf32> to vector<8x32xf32>
    %206 = math.tanh %205 : vector<8x32xf32>
    %207 = vector.extract_strided_slice %204 {offsets = [0, 32], sizes = [8, 32], strides = [1, 1]} : vector<8x96xf32> to vector<8x32xf32>
    %208 = arith.mulf %207, %172 : vector<8x32xf32>
    %209 = vector.extract_strided_slice %204 {offsets = [0, 0], sizes = [8, 32], strides = [1, 1]} : vector<8x96xf32> to vector<8x32xf32>
    %210 = arith.mulf %209, %206 : vector<8x32xf32>
    %211 = arith.addf %208, %210 : vector<8x32xf32>
    %212 = vector.extract_strided_slice %204 {offsets = [0, 64], sizes = [8, 32], strides = [1, 1]} : vector<8x96xf32> to vector<8x32xf32>
    %213 = math.tanh %211 : vector<8x32xf32>
    %214 = arith.mulf %212, %213 : vector<8x32xf32>
    %215 = vector.extract_strided_slice %197 {offsets = [0, 128], sizes = [8, 128], strides = [1, 1]} : vector<8x256xf32> to vector<8x128xf32>
    %216 = vector.extract_strided_slice %215 {offsets = [0, 0], sizes = [8, 96], strides = [1, 1]} : vector<8x128xf32> to vector<8x96xf32>
    %217 = arith.negf %216 : vector<8x96xf32>
    %218 = math.exp %217 : vector<8x96xf32>
    %cst_30 = arith.constant 1.000000e+00 : f32
    %219 = vector.broadcast %cst_30 : f32 to vector<8x96xf32>
    %220 = arith.addf %219, %218 : vector<8x96xf32>
    %221 = arith.divf %219, %220 : vector<8x96xf32>
    %222 = vector.extract_strided_slice %215 {offsets = [0, 96], sizes = [8, 32], strides = [1, 1]} : vector<8x128xf32> to vector<8x32xf32>
    %223 = math.tanh %222 : vector<8x32xf32>
    %224 = vector.extract_strided_slice %221 {offsets = [0, 32], sizes = [8, 32], strides = [1, 1]} : vector<8x96xf32> to vector<8x32xf32>
    %225 = arith.mulf %224, %189 : vector<8x32xf32>
    %226 = vector.extract_strided_slice %221 {offsets = [0, 0], sizes = [8, 32], strides = [1, 1]} : vector<8x96xf32> to vector<8x32xf32>
    %227 = arith.mulf %226, %223 : vector<8x32xf32>
    %228 = arith.addf %225, %227 : vector<8x32xf32>
    %229 = vector.extract_strided_slice %221 {offsets = [0, 64], sizes = [8, 32], strides = [1, 1]} : vector<8x96xf32> to vector<8x32xf32>
    %230 = math.tanh %228 : vector<8x32xf32>
    %231 = arith.mulf %229, %230 : vector<8x32xf32>
    %c32 = arith.constant 32 : index
    %c0_31 = arith.constant 0 : index
    %232 = vector.load %arg10[%c32, %c0_31] : memref<64x32xf32, #tpu.memory_space<vmem>>, vector<8x32xf32>
    tpu.vector_store %arg10[%c32, %c0_31], %231 {strides = array<i32>} : memref<64x32xf32, #tpu.memory_space<vmem>>, vector<8x32xf32>,
    %233 = tpu.concatenate %214, %231 in 1 : vector<8x32xf32>, vector<8x32xf32> -> vector<8x64xf32>
    %cst_32 = arith.constant dense<0.000000e+00> : vector<8x256xf32>
    %234 = tpu.matmul %233, %16, %cst_32 {dimension_numbers = #tpu.dot_dimension_numbers<[1], [0], [0], [1], [0, 0, 1, 1], [], []>} : vector<8x64xf32>, vector<64x256xf32>, vector<8x256xf32> -> vector<8x256xf32>
    %235 = vector.extract_strided_slice %10 {offsets = [48, 0], sizes = [8, 256], strides = [1, 1]} : vector<64x256xf32> to vector<8x256xf32>
    %236 = arith.addf %234, %235 : vector<8x256xf32>
    %237 = vector.extract_strided_slice %236 {offsets = [0, 0], sizes = [8, 128], strides = [1, 1]} : vector<8x256xf32> to vector<8x128xf32>
    %238 = vector.extract_strided_slice %237 {offsets = [0, 0], sizes = [8, 96], strides = [1, 1]} : vector<8x128xf32> to vector<8x96xf32>
    %239 = arith.negf %238 : vector<8x96xf32>
    %240 = math.exp %239 : vector<8x96xf32>
    %cst_33 = arith.constant 1.000000e+00 : f32
    %241 = vector.broadcast %cst_33 : f32 to vector<8x96xf32>
    %242 = arith.addf %241, %240 : vector<8x96xf32>
    %243 = arith.divf %241, %242 : vector<8x96xf32>
    %244 = vector.extract_strided_slice %237 {offsets = [0, 96], sizes = [8, 32], strides = [1, 1]} : vector<8x128xf32> to vector<8x32xf32>
    %245 = math.tanh %244 : vector<8x32xf32>
    %246 = vector.extract_strided_slice %243 {offsets = [0, 32], sizes = [8, 32], strides = [1, 1]} : vector<8x96xf32> to vector<8x32xf32>
    %247 = arith.mulf %246, %211 : vector<8x32xf32>
    %248 = vector.extract_strided_slice %243 {offsets = [0, 0], sizes = [8, 32], strides = [1, 1]} : vector<8x96xf32> to vector<8x32xf32>
    %249 = arith.mulf %248, %245 : vector<8x32xf32>
    %250 = arith.addf %247, %249 : vector<8x32xf32>
    %251 = vector.extract_strided_slice %243 {offsets = [0, 64], sizes = [8, 32], strides = [1, 1]} : vector<8x96xf32> to vector<8x32xf32>
    %252 = math.tanh %250 : vector<8x32xf32>
    %253 = arith.mulf %251, %252 : vector<8x32xf32>
    %254 = vector.extract_strided_slice %236 {offsets = [0, 128], sizes = [8, 128], strides = [1, 1]} : vector<8x256xf32> to vector<8x128xf32>
    %255 = vector.extract_strided_slice %254 {offsets = [0, 0], sizes = [8, 96], strides = [1, 1]} : vector<8x128xf32> to vector<8x96xf32>
    %256 = arith.negf %255 : vector<8x96xf32>
    %257 = math.exp %256 : vector<8x96xf32>
    %cst_34 = arith.constant 1.000000e+00 : f32
    %258 = vector.broadcast %cst_34 : f32 to vector<8x96xf32>
    %259 = arith.addf %258, %257 : vector<8x96xf32>
    %260 = arith.divf %258, %259 : vector<8x96xf32>
    %261 = vector.extract_strided_slice %254 {offsets = [0, 96], sizes = [8, 32], strides = [1, 1]} : vector<8x128xf32> to vector<8x32xf32>
    %262 = math.tanh %261 : vector<8x32xf32>
    %263 = vector.extract_strided_slice %260 {offsets = [0, 32], sizes = [8, 32], strides = [1, 1]} : vector<8x96xf32> to vector<8x32xf32>
    %264 = arith.mulf %263, %228 : vector<8x32xf32>
    %265 = vector.extract_strided_slice %260 {offsets = [0, 0], sizes = [8, 32], strides = [1, 1]} : vector<8x96xf32> to vector<8x32xf32>
    %266 = arith.mulf %265, %262 : vector<8x32xf32>
    %267 = arith.addf %264, %266 : vector<8x32xf32>
    %268 = vector.extract_strided_slice %260 {offsets = [0, 64], sizes = [8, 32], strides = [1, 1]} : vector<8x96xf32> to vector<8x32xf32>
    %269 = math.tanh %267 : vector<8x32xf32>
    %270 = arith.mulf %268, %269 : vector<8x32xf32>
    %c40 = arith.constant 40 : index
    %c0_35 = arith.constant 0 : index
    %271 = vector.load %arg10[%c40, %c0_35] : memref<64x32xf32, #tpu.memory_space<vmem>>, vector<8x32xf32>
    tpu.vector_store %arg10[%c40, %c0_35], %270 {strides = array<i32>} : memref<64x32xf32, #tpu.memory_space<vmem>>, vector<8x32xf32>,
    %272 = tpu.concatenate %253, %270 in 1 : vector<8x32xf32>, vector<8x32xf32> -> vector<8x64xf32>
    %cst_36 = arith.constant dense<0.000000e+00> : vector<8x256xf32>
    %273 = tpu.matmul %272, %16, %cst_36 {dimension_numbers = #tpu.dot_dimension_numbers<[1], [0], [0], [1], [0, 0, 1, 1], [], []>} : vector<8x64xf32>, vector<64x256xf32>, vector<8x256xf32> -> vector<8x256xf32>
    %274 = vector.extract_strided_slice %10 {offsets = [56, 0], sizes = [8, 256], strides = [1, 1]} : vector<64x256xf32> to vector<8x256xf32>
    %275 = arith.addf %273, %274 : vector<8x256xf32>
    %276 = vector.extract_strided_slice %275 {offsets = [0, 0], sizes = [8, 128], strides = [1, 1]} : vector<8x256xf32> to vector<8x128xf32>
    %277 = vector.extract_strided_slice %276 {offsets = [0, 0], sizes = [8, 96], strides = [1, 1]} : vector<8x128xf32> to vector<8x96xf32>
    %278 = arith.negf %277 : vector<8x96xf32>
    %279 = math.exp %278 : vector<8x96xf32>
    %cst_37 = arith.constant 1.000000e+00 : f32
    %280 = vector.broadcast %cst_37 : f32 to vector<8x96xf32>
    %281 = arith.addf %280, %279 : vector<8x96xf32>
    %282 = arith.divf %280, %281 : vector<8x96xf32>
    %283 = vector.extract_strided_slice %276 {offsets = [0, 96], sizes = [8, 32], strides = [1, 1]} : vector<8x128xf32> to vector<8x32xf32>
    %284 = math.tanh %283 : vector<8x32xf32>
    %285 = vector.extract_strided_slice %282 {offsets = [0, 32], sizes = [8, 32], strides = [1, 1]} : vector<8x96xf32> to vector<8x32xf32>
    %286 = arith.mulf %285, %250 : vector<8x32xf32>
    %287 = vector.extract_strided_slice %282 {offsets = [0, 0], sizes = [8, 32], strides = [1, 1]} : vector<8x96xf32> to vector<8x32xf32>
    %288 = arith.mulf %287, %284 : vector<8x32xf32>
    %289 = arith.addf %286, %288 : vector<8x32xf32>
    %290 = vector.extract_strided_slice %282 {offsets = [0, 64], sizes = [8, 32], strides = [1, 1]} : vector<8x96xf32> to vector<8x32xf32>
    %291 = math.tanh %289 : vector<8x32xf32>
    %292 = arith.mulf %290, %291 : vector<8x32xf32>
    %293 = vector.extract_strided_slice %275 {offsets = [0, 128], sizes = [8, 128], strides = [1, 1]} : vector<8x256xf32> to vector<8x128xf32>
    %294 = vector.extract_strided_slice %293 {offsets = [0, 0], sizes = [8, 96], strides = [1, 1]} : vector<8x128xf32> to vector<8x96xf32>
    %295 = arith.negf %294 : vector<8x96xf32>
    %296 = math.exp %295 : vector<8x96xf32>
    %cst_38 = arith.constant 1.000000e+00 : f32
    %297 = vector.broadcast %cst_38 : f32 to vector<8x96xf32>
    %298 = arith.addf %297, %296 : vector<8x96xf32>
    %299 = arith.divf %297, %298 : vector<8x96xf32>
    %300 = vector.extract_strided_slice %293 {offsets = [0, 96], sizes = [8, 32], strides = [1, 1]} : vector<8x128xf32> to vector<8x32xf32>
    %301 = math.tanh %300 : vector<8x32xf32>
    %302 = vector.extract_strided_slice %299 {offsets = [0, 32], sizes = [8, 32], strides = [1, 1]} : vector<8x96xf32> to vector<8x32xf32>
    %303 = arith.mulf %302, %267 : vector<8x32xf32>
    %304 = vector.extract_strided_slice %299 {offsets = [0, 0], sizes = [8, 32], strides = [1, 1]} : vector<8x96xf32> to vector<8x32xf32>
    %305 = arith.mulf %304, %301 : vector<8x32xf32>
    %306 = arith.addf %303, %305 : vector<8x32xf32>
    %307 = vector.extract_strided_slice %299 {offsets = [0, 64], sizes = [8, 32], strides = [1, 1]} : vector<8x96xf32> to vector<8x32xf32>
    %308 = math.tanh %306 : vector<8x32xf32>
    %309 = arith.mulf %307, %308 : vector<8x32xf32>
    %c48 = arith.constant 48 : index
    %c0_39 = arith.constant 0 : index
    %310 = vector.load %arg10[%c48, %c0_39] : memref<64x32xf32, #tpu.memory_space<vmem>>, vector<8x32xf32>
    tpu.vector_store %arg10[%c48, %c0_39], %309 {strides = array<i32>} : memref<64x32xf32, #tpu.memory_space<vmem>>, vector<8x32xf32>,
    %311 = tpu.concatenate %292, %309 in 1 : vector<8x32xf32>, vector<8x32xf32> -> vector<8x64xf32>
    %cst_40 = arith.constant dense<0.000000e+00> : vector<8x256xf32>
    %312 = tpu.matmul %311, %16, %cst_40 {dimension_numbers = #tpu.dot_dimension_numbers<[1], [0], [0], [1], [0, 0, 1, 1], [], []>} : vector<8x64xf32>, vector<64x256xf32>, vector<8x256xf32> -> vector<8x256xf32>
    %313 = vector.broadcast %6 : vector<1x256xf32> to vector<8x256xf32>
    %314 = arith.addf %312, %313 : vector<8x256xf32>
    %315 = vector.extract_strided_slice %314 {offsets = [0, 128], sizes = [8, 128], strides = [1, 1]} : vector<8x256xf32> to vector<8x128xf32>
    %316 = vector.extract_strided_slice %315 {offsets = [0, 0], sizes = [8, 96], strides = [1, 1]} : vector<8x128xf32> to vector<8x96xf32>
    %317 = arith.negf %316 : vector<8x96xf32>
    %318 = math.exp %317 : vector<8x96xf32>
    %cst_41 = arith.constant 1.000000e+00 : f32
    %319 = vector.broadcast %cst_41 : f32 to vector<8x96xf32>
    %320 = arith.addf %319, %318 : vector<8x96xf32>
    %321 = arith.divf %319, %320 : vector<8x96xf32>
    %322 = vector.extract_strided_slice %315 {offsets = [0, 96], sizes = [8, 32], strides = [1, 1]} : vector<8x128xf32> to vector<8x32xf32>
    %323 = math.tanh %322 : vector<8x32xf32>
    %324 = vector.extract_strided_slice %321 {offsets = [0, 32], sizes = [8, 32], strides = [1, 1]} : vector<8x96xf32> to vector<8x32xf32>
    %325 = arith.mulf %324, %306 : vector<8x32xf32>
    %326 = vector.extract_strided_slice %321 {offsets = [0, 0], sizes = [8, 32], strides = [1, 1]} : vector<8x96xf32> to vector<8x32xf32>
    %327 = arith.mulf %326, %323 : vector<8x32xf32>
    %328 = arith.addf %325, %327 : vector<8x32xf32>
    %329 = vector.extract_strided_slice %321 {offsets = [0, 64], sizes = [8, 32], strides = [1, 1]} : vector<8x96xf32> to vector<8x32xf32>
    %330 = math.tanh %328 : vector<8x32xf32>
    %331 = arith.mulf %329, %330 : vector<8x32xf32>
    %c56 = arith.constant 56 : index
    %c0_42 = arith.constant 0 : index
    %332 = vector.load %arg10[%c56, %c0_42] : memref<64x32xf32, #tpu.memory_space<vmem>>, vector<8x32xf32>
    tpu.vector_store %arg10[%c56, %c0_42], %331 {strides = array<i32>} : memref<64x32xf32, #tpu.memory_space<vmem>>, vector<8x32xf32>,
    %c0_43 = arith.constant 0 : index
    %c0_44 = arith.constant 0 : index
    %333 = vector.load %arg10[%c0_43, %c0_44] : memref<64x32xf32, #tpu.memory_space<vmem>>, vector<64x32xf32>
    %c0_45 = arith.constant 0 : index
    %c0_46 = arith.constant 0 : index
    %334 = vector.load %arg5[%c0_45, %c0_46] : memref<32x128xf32, #tpu.memory_space<vmem>>, vector<32x128xf32>
    %cst_47 = arith.constant dense<0.000000e+00> : vector<64x128xf32>
    %335 = tpu.matmul %333, %334, %cst_47 {dimension_numbers = #tpu.dot_dimension_numbers<[1], [0], [0], [1], [0, 0, 1, 1], [], []>} : vector<64x32xf32>, vector<32x128xf32>, vector<64x128xf32> -> vector<64x128xf32>
    %c0_48 = arith.constant 0 : index
    %c0_49 = arith.constant 0 : index
    %336 = vector.load %arg6[%c0_48, %c0_49] : memref<1x128xf32, #tpu.memory_space<vmem>>, vector<1x128xf32>
    %337 = vector.broadcast %336 : vector<1x128xf32> to vector<64x128xf32>
    %338 = arith.addf %335, %337 : vector<64x128xf32>
    %c0_50 = arith.constant 0 : index
    %c0_51 = arith.constant 0 : index
    %339 = vector.load %arg8[%c0_50, %c0_51] : memref<64x128xf32, #tpu.memory_space<vmem>>, vector<64x128xf32>
    tpu.vector_store %arg8[%c0_50, %c0_51], %338 {strides = array<i32>} : memref<64x128xf32, #tpu.memory_space<vmem>>, vector<64x128xf32>,
    %340 = tpu.concatenate %292, %289, %331, %328 in 1 : vector<8x32xf32>, vector<8x32xf32>, vector<8x32xf32>, vector<8x32xf32> -> vector<8x128xf32>
    %c0_52 = arith.constant 0 : index
    %c0_53 = arith.constant 0 : index
    %341 = vector.load %arg9[%c0_52, %c0_53] : memref<8x128xf32, #tpu.memory_space<vmem>>, vector<8x128xf32>
    tpu.vector_store %arg9[%c0_52, %c0_53], %340 {strides = array<i32>} : memref<8x128xf32, #tpu.memory_space<vmem>>, vector<8x128xf32>,
    return
  }
  func.func @transform_0(%arg0: i32) -> (i32, i32) {
    %c0_i32 = arith.constant 0 : i32
    %c0_i32_0 = arith.constant 0 : i32
    %c0_i32_1 = arith.constant 0 : i32
    return %c0_i32, %c0_i32_0 : i32, i32
  }
  func.func @transform_1(%arg0: i32) -> (i32, i32) {
    %c0_i32 = arith.constant 0 : i32
    %c0_i32_0 = arith.constant 0 : i32
    %c0_i32_1 = arith.constant 0 : i32
    return %c0_i32, %c0_i32_0 : i32, i32
  }
  func.func @transform_2(%arg0: i32) -> (i32, i32) {
    %c0_i32 = arith.constant 0 : i32
    %c0_i32_0 = arith.constant 0 : i32
    %c0_i32_1 = arith.constant 0 : i32
    return %c0_i32, %c0_i32_0 : i32, i32
  }
  func.func @transform_3(%arg0: i32) -> (i32, i32) {
    %c0_i32 = arith.constant 0 : i32
    %c0_i32_0 = arith.constant 0 : i32
    %c0_i32_1 = arith.constant 0 : i32
    return %c0_i32, %c0_i32_0 : i32, i32
  }
  func.func @transform_4(%arg0: i32) -> (i32, i32) {
    %c0_i32 = arith.constant 0 : i32
    %c0_i32_0 = arith.constant 0 : i32
    %c0_i32_1 = arith.constant 0 : i32
    return %c0_i32, %c0_i32_0 : i32, i32
  }
  func.func @transform_5(%arg0: i32) -> (i32, i32) {
    %c0_i32 = arith.constant 0 : i32
    %c0_i32_0 = arith.constant 0 : i32
    %c0_i32_1 = arith.constant 0 : i32
    return %c0_i32, %c0_i32_0 : i32, i32
  }
  func.func @transform_6(%arg0: i32) -> (i32, i32) {
    %c0_i32 = arith.constant 0 : i32
    %c0_i32_0 = arith.constant 0 : i32
    %c0_i32_1 = arith.constant 0 : i32
    return %c0_i32, %c0_i32_0 : i32, i32
  }
  func.func @transform_7(%arg0: i32) -> (i32, i32) {
    %c0_i32 = arith.constant 0 : i32
    %c0_i32_0 = arith.constant 0 : i32
    %c0_i32_1 = arith.constant 0 : i32
    return %c0_i32, %c0_i32_0 : i32, i32
  }
  func.func @transform_8(%arg0: i32) -> (i32, i32) {
    %c0_i32 = arith.constant 0 : i32
    %c0_i32_0 = arith.constant 0 : i32
    %c0_i32_1 = arith.constant 0 : i32
    return %c0_i32, %c0_i32_0 : i32, i32
  }
}

</mosaic_0001>

<bundles_post_ra>
// kernel: lstm_forward.1
= control target key start
LH: loop header
LB: loop body
LE: loop exit
PB: predicated region body
PF: predicated region fallthrough
CT: control target
= control target key end

     0   :  { %14 = vsyncpa [#allocation4], 0  ;;  %s2066_s27 = smov [#allocation3]   ;;  %s2555_s0 = inlined_call_operand.vmem [shape: s32[64,1], index: 0, kind: input, shape index: {}]   ;;  %s2556_s1 = inlined_call_operand.hbm [shape: f32[128,256], index: 1, kind: input, shape index: {}]   ;;  %s2557_s2 = inlined_call_operand.vmem [shape: f32[1,256], index: 2, kind: input, shape index: {}]   ;;  %s2558_s3 = inlined_call_operand.vmem [shape: f32[64,256], index: 3, kind: input, shape index: {}]   ;;  %s2559_s4 = inlined_call_operand.vmem [shape: f32[32,128], index: 4, kind: input, shape index: {}]   ;;  %s2560_s5 = inlined_call_operand.vmem [shape: f32[1,128], index: 5, kind: input, shape index: {}]   ;;  %s2561_s6 = inlined_call_operand.vmem [shape: f32[8,128], index: 6, kind: input, shape index: {}]   ;;  %s2562_s7 = inlined_call_operand.vmem [shape: f32[64,128], index: 7, kind: output, shape index: {0}]   ;;  %s2563_s8 = inlined_call_operand.vmem [shape: f32[8,128], index: 8, kind: output, shape index: {1}]  }
   0x1   :  { %s22_s28 = sshll.u32 %s2066_s27, 4  ;;  %s2042_s9 = scalar_lea.hbm %s2556_s1, 4096  ;;  %s23_s28 = int_to_ptr.vmem [resolvable:$true] %s22_s28 }
   0x2   :  { %p2043_p0 = scmp.ne.s32.totalorder %s2556_s1, %s2042_s9  ;;  %p2046_p1 = scmp.lt.u32.totalorder %s2042_s9, %s2556_s1 }
   0x4   :  { %p2048_p2 = pnand %p2046_p1, %p2043_p0 }
   0x6   :  { %2051 = shalt.err (!%p2048_p2)
}
   0x7   :  { %s2052_s14 = scalar_lea.vmem %s23_s28, 4096  ;;  %p2057_p4 = scmp.lt.s32.totalorder %s23_s28, %s23_s28 }
   0x8   :  { %p2053_p3 = scmp.ne.s32.totalorder %s23_s28, %s2052_s14  ;;  %p2058_p5 = scmp.lt.s32.totalorder %s2052_s14, %s2052_s14 }
   0xa   :  { %p2059_p6 = por %p2058_p5, %p2057_p4 }
   0xc   :  { %p2060_p7 = pnand %p2059_p6, %p2053_p3 }
   0xe   :  { %2063 = shalt.err (!%p2060_p7)
}
   0xf   :  { %s2067_s15 = smov 256   ;;  %s2068_s16 = smov 16  }
  0x10   :  { %28 = dma.hbm_to_vmem [thread:$0]  %s2556_s1, 4096, %s23_s28, [#allocation4], %s2067_s15, %s2067_s15, %s2068_s16  }
  0x11   :  { %2064 = dma.done.wait [#allocation4], 4096  }
  0x12   :  { %2065 = vsyncadd [#allocation4], 4294963200  ;;  %v2069_v0 = vmov 0   ;;  %v44_v1 = vld [vmem:[%s2555_s0 + $0x10] sm:$0xff]  ;;  %v42_v2 = vld [vmem:[%s2555_s0] sm:$0xff]  ;;  %v2070_v5 = vmov 0.0  }
  0x13   :  { %1913 = vset.pattern.permute.xlu1 %v2069_v0  ;;  %1912 = vset.pattern.permute.xlu0 %v2069_v0  ;;  %v45_v3 = vld [vmem:[%s2555_s0 + $0x18] sm:$0xff]  ;;  %v43_v4 = vld [vmem:[%s2555_s0 + $0x8] sm:$0xff]  ;;  %v101_v8 = vld [vmem:[#allocation3] sm:$0xff]  ;;  %s2071_s24 = smov 96   ;;  %vm277_vm7 = vcmask 261120   ;;  %vm279_vm9 = vcmask 523264  }
  0x14   :  { %59 = vperm.xlu1 %1913, %v44_v1   ;;  %53 = vperm.xlu0 %1912, %v42_v2   ;;  %v102_v6 = vld [vmem:[#allocation3 + $0x8] sm:$0xff]  ;;  %v104_v7 = vld [vmem:[#allocation3 + $0x18] sm:$0xff]  ;;  %v103_v10 = vld [vmem:[#allocation3 + $0x10] sm:$0xff]  ;;  %s2074_s21 = smov 64   ;;  %vm1594_vm10 = vcmask 785408  }
  0x15   :  { %208 = vmatprep.mubr.f32.mxu1 %v2070_v5  ;;  %449 = vmatprep.mubr.f32.mxu0 %v2070_v5  ;;  %v1688_v9 = vpack.c.bf16 %v104_v7, %v102_v6  ;;  %v106_v11 = vld [vmem:[#allocation3 + $0x28] sm:$0xff]  ;;  %v108_v12 = vld [vmem:[#allocation3 + $0x38] sm:$0xff]  ;;  %v1690_v13 = vpack.c.bf16 %v103_v10, %v101_v8  ;;  %v105_v15 = vld [vmem:[#allocation3 + $0x20] sm:$0xff] }
  0x16   :  { %v1692_v14 = vpack.c.bf16 %v108_v12, %v106_v11  ;;  %v107_v16 = vld [vmem:[#allocation3 + $0x30] sm:$0xff]  ;;  %v110_v17 = vld [vmem:[#allocation3 + $0x48] sm:$0xff]  ;;  %v46_v19 = vld [vmem:[%s2555_s0 + $0x20] sm:$0xff] }
  0x17   :  { %v47_v18 = vld [vmem:[%s2555_s0 + $0x28] sm:$0xff]  ;;  %1689 = vmatprep.subr.bf16.mxu1 %v1688_v9  ;;  %v112_v20 = vld [vmem:[#allocation3 + $0x58] sm:$0xff]  ;;  %v1694_v21 = vpack.c.bf16 %v107_v16, %v105_v15  ;;  %v109_v23 = vld [vmem:[#allocation3 + $0x40] sm:$0xff] }
  0x18   :  { %62 = vperm.xlu1 %1913, %v45_v3   ;;  %56 = vperm.xlu0 %1912, %v43_v4   ;;  %v1696_v22 = vpack.c.bf16 %v112_v20, %v110_v17  ;;  %v111_v24 = vld [vmem:[#allocation3 + $0x50] sm:$0xff]  ;;  %v114_v25 = vld [vmem:[#allocation3 + $0x68] sm:$0xff]  ;;  %v116_v26 = vld [vmem:[#allocation3 + $0x78] sm:$0xff]  ;;  %v50_v20 = vlaneseq }
  0x19   :  { %1691 = vmatpush1.bf16.msra.mxu1 %v1690_v13  ;;  %v49_v27 = vld [vmem:[%s2555_s0 + $0x38] sm:$0xff]  ;;  %v48_v28 = vld [vmem:[%s2555_s0 + $0x30] sm:$0xff]  ;;  %v1698_v29 = vpack.c.bf16 %v111_v24, %v109_v23  ;;  %v2161_v30 = vld [vmem:[%s2561_s6] sm:$0xff]  ;;  %v1700_v31 = vpack.c.bf16 %v116_v26, %v114_v25  ;;  %v2072_v23 = vmov 1.0  }
  0x1a   :  { %1693 = vmatprep.subr.bf16.mxu1 %v1692_v14  ;;  %v113_v32 = vld [vmem:[#allocation3 + $0x60] sm:$0xff]  ;;  %v115_v33 = vld [vmem:[#allocation3 + $0x70] sm:$0xff]  ;;  %v118_v34 = vld [vmem:[#allocation3 + $0x88] sm:$0xff] }
  0x1b   :  { %v120_v35 = vld [vmem:[#allocation3 + $0x98] sm:$0xff]  ;;  %v258_v36 = vld [vmem:[%s2558_s3 + $0x8] sm:$0xff]  ;;  %v257_v38 = vld [vmem:[%s2558_s3] sm:$0xff]  ;;  %v1702_v40 = vpack.c.bf16 %v115_v33, %v113_v32 }
  0x1c   :  { %68 = vperm.xlu1 %1913, %v47_v18   ;;  %65 = vperm.xlu0 %1912, %v46_v19   ;;  %v260_v37 = vld [vmem:[%s2558_s3 + $0x18] sm:$0xff]  ;;  %v259_v39 = vld [vmem:[%s2558_s3 + $0x10] sm:$0xff]  ;;  %v262_v42 = vld [vmem:[%s2558_s3 + $0x28] sm:$0xff]  ;;  %v1704_v44 = vpack.c.bf16 %v120_v35, %v118_v34  ;;  %v2269_v34 = vshrl.u32 %v50_v20, 7 }
  0x1d   :  { %1695 = vmatpush1.bf16.msra.mxu1 %v1694_v21  ;;  %v2175_v41 = vpack.c.bf16 %v260_v37, %v258_v36  ;;  %v264_v43 = vld [vmem:[%s2558_s3 + $0x38] sm:$0xff]  ;;  %v117_v45 = vld [vmem:[#allocation3 + $0x80] sm:$0xff]  ;;  %v119_v46 = vld [vmem:[#allocation3 + $0x90] sm:$0xff]  ;;  %v2183_v48 = vpack.c.bf16 %v259_v39, %v257_v38  ;;  %v51_v21 = vand.u32 127, %v50_v20 }
  0x1e   :  { %1697 = vmatprep.subr.bf16.mxu1 %v1696_v22  ;;  %v122_v47 = vld [vmem:[#allocation3 + $0xa8] sm:$0xff]  ;;  %v124_v49 = vld [vmem:[#allocation3 + $0xb8] sm:$0xff]  ;;  %v2187_v50 = vpack.c.bf16 %v264_v43, %v262_v42  ;;  %v261_v51 = vld [vmem:[%s2558_s3 + $0x20] sm:$0xff]  ;;  %v1706_v55 = vpack.c.bf16 %v119_v46, %v117_v45  ;;  %v136_v35 = vsub.s32 0, %v2269_v34 }
  0x1f   :  { %v263_v52 = vld [vmem:[%s2558_s3 + $0x30] sm:$0xff]  ;;  %1737 = vmatprep.subr.bf16.mxu0 %v2175_v41  ;;  %v266_v53 = vld [vmem:[%s2558_s3 + $0x48] sm:$0xff]  ;;  %v268_v54 = vld [vmem:[%s2558_s3 + $0x58] sm:$0xff]  ;;  %v1708_v56 = vpack.c.bf16 %v124_v49, %v122_v47 }
  0x20   :  { %74 = vperm.xlu1 %1913, %v49_v27   ;;  %71 = vperm.xlu0 %1912, %v48_v28   ;;  %v121_v57 = vld [vmem:[#allocation3 + $0xa0] sm:$0xff]  ;;  %v123_v58 = vld [vmem:[#allocation3 + $0xb0] sm:$0xff]  ;;  %v126_v59 = vld [vmem:[#allocation3 + $0xc8] sm:$0xff]  ;;  %v2204_v60 = vpack.c.bf16 %v263_v52, %v261_v51  ;;  %v2206_v62 = vpack.c.bf16 %v268_v54, %v266_v53 }
  0x21   :  { %1699 = vmatpush1.bf16.msra.mxu1 %v1698_v29  ;;  %1739 = vmatpush1.bf16.msra.mxu0 %v2183_v48  ;;  %v128_v61 = vld [vmem:[#allocation3 + $0xd8] sm:$0xff]  ;;  %v265_v63 = vld [vmem:[%s2558_s3 + $0x40] sm:$0xff]  ;;  %v267_v0 = vld [vmem:[%s2558_s3 + $0x50] sm:$0xff]  ;;  %v1710_v1 = vpack.c.bf16 %v123_v58, %v121_v57 }
  0x22   :  { %1701 = vmatprep.subr.bf16.mxu1 %v1700_v31  ;;  %1741 = vmatprep.subr.bf16.mxu0 %v2187_v50  ;;  %v270_v2 = vld [vmem:[%s2558_s3 + $0x68] sm:$0xff]  ;;  %v272_v3 = vld [vmem:[%s2558_s3 + $0x78] sm:$0xff]  ;;  %v1712_v4 = vpack.c.bf16 %v128_v61, %v126_v59  ;;  %v125_v6 = vld [vmem:[#allocation3 + $0xc0] sm:$0xff]  ;;  %v2222_v8 = vpack.c.bf16 %v267_v0, %v265_v63 }
  0x23   :  { %v127_v7 = vld [vmem:[#allocation3 + $0xd0] sm:$0xff]  ;;  %v130_v9 = vld [vmem:[#allocation3 + $0xe8] sm:$0xff]  ;;  %v132_v10 = vld [vmem:[#allocation3 + $0xf8] sm:$0xff]  ;;  %v2224_v11 = vpack.c.bf16 %v272_v3, %v270_v2 }
  0x24   :  { %274 = vrot.lane.b32.xlu0 %v2161_v30, %s2071_s24  ;;  %v269_v12 = vld [vmem:[%s2558_s3 + $0x60] sm:$0xff]  ;;  %v271_v13 = vld [vmem:[%s2558_s3 + $0x70] sm:$0xff]  ;;  %v1714_v14 = vpack.c.bf16 %v127_v7, %v125_v6  ;;  %v1716_v15 = vpack.c.bf16 %v132_v10, %v130_v9 }
  0x25   :  { %1703 = vmatpush1.bf16.msra.mxu1 %v1702_v40  ;;  %1743 = vmatpush1.bf16.msra.mxu0 %v2204_v60  ;;  %v129_v16 = vld [vmem:[#allocation3 + $0xe0] sm:$0xff]  ;;  %v131_v17 = vld [vmem:[#allocation3 + $0xf0] sm:$0xff]  ;;  %v2234_v18 = vpack.c.bf16 %v271_v13, %v269_v12 }
  0x26   :  { %1705 = vmatprep.subr.bf16.mxu1 %v1704_v44  ;;  %1745 = vmatprep.subr.bf16.mxu0 %v2206_v62  ;;  %v1718_v19 = vpack.c.bf16 %v131_v17, %v129_v16  ;;  %v100_v36 = vld [vmem:[%s2557_s2] sm:$0x3]  ;;  %s2073_s2 = smov 32  }
  0x27   :  { %v137_v37 = vrot.slane %v100_v36, %v136_v35 }
  0x29   :  { %1707 = vmatpush1.bf16.msra.mxu1 %v1706_v55  ;;  %1747 = vmatpush1.bf16.msra.mxu0 %v2222_v8 }
  0x2a   :  { %1709 = vmatprep.subr.bf16.mxu1 %v1708_v56  ;;  %1749 = vmatprep.subr.bf16.mxu0 %v2224_v11 }
  0x2d   :  { %1711 = vmatpush1.bf16.msra.mxu1 %v1710_v1  ;;  %1751 = vmatpush1.bf16.msra.mxu0 %v2234_v18 }
  0x2e   :  { %1713 = vmatprep.subr.bf16.mxu1 %v1712_v4  ;;  %1753 = vmatprep.subr.bf16.mxu0 %v2175_v41 }
  0x31   :  { %1715 = vmatpush1.bf16.msra.mxu1 %v1714_v14 }
  0x32   :  { %1717 = vmatprep.subr.bf16.mxu1 %v1716_v15 }
  0x35   :  { %1719 = vmatpush1.bf16.msra.mxu1 %v1718_v19 }
  0x36   :  { %1721 = vmatprep.subr.bf16.mxu1 %v2175_v41 }
  0x93   :  { %v54_v22 = vpop.permute.xlu0 %53  ;;  %v60_v25 = vpop.permute.xlu1 %59 }
  0x94   :  { %vm76_vm0 = vcmp.eq.s32.totalorder %v51_v21, %v54_v22  ;;  %vm78_vm2 = vcmp.eq.s32.totalorder %v51_v21, %v60_v25  ;;  %v140_v22 = vsub.s32 1, %v2269_v34 }
  0x95   :  { %1614 = vmatmul.mubr.msk.f32.vlgmr.msra.gmra.mrb[0].mxu1 %vm76_vm0, %v2072_v23 }
  0x96   :  { %1723 = vmatpush1.bf16.msra.mxu1 %v2183_v48  ;;  %213 = vmatprep.mubr.f32.mxu1 %v2070_v5 }
  0x97   :  { %v57_v24 = vpop.permute.xlu0 %56  ;;  %1725 = vmatprep.subr.bf16.mxu1 %v2187_v50  ;;  %v63_v26 = vpop.permute.xlu1 %62 }
  0x98   :  { %vm77_vm1 = vcmp.eq.s32.totalorder %v51_v21, %v57_v24  ;;  %vm79_vm3 = vcmp.eq.s32.totalorder %v51_v21, %v63_v26 }
  0x99   :  { %1615 = vmatmul.mubr.msk.f32.gmra.mrb[2].mxu1 %vm77_vm1, %v2072_v23 }
  0x9a   :  { %219 = vmatprep.mubr.f32.mxu1 %v2070_v5  ;;  %1727 = vmatpush1.bf16.msra.mxu1 %v2204_v60 }
  0x9b   :  { %1729 = vmatprep.subr.bf16.mxu1 %v2206_v62  ;;  %v66_v27 = vpop.permute.xlu0 %65  ;;  %v69_v28 = vpop.permute.xlu1 %68 }
  0x9c   :  { %vm80_vm4 = vcmp.eq.s32.totalorder %v51_v21, %v66_v27  ;;  %vm81_vm5 = vcmp.eq.s32.totalorder %v51_v21, %v69_v28 }
  0x9d   :  { %1616 = vmatmul.mubr.msk.f32.gmra.mrb[4].mxu1 %vm78_vm2, %v2072_v23 }
  0x9e   :  { %225 = vmatprep.mubr.f32.mxu1 %v2070_v5  ;;  %1731 = vmatpush1.bf16.msra.mxu1 %v2222_v8 }
  0x9f   :  { %1733 = vmatprep.subr.bf16.mxu1 %v2224_v11  ;;  %v72_v29 = vpop.permute.xlu0 %71  ;;  %v75_v31 = vpop.permute.xlu1 %74 }
  0xa0   :  { %vm82_vm6 = vcmp.eq.s32.totalorder %v51_v21, %v72_v29  ;;  %vm83_vm8 = vcmp.eq.s32.totalorder %v51_v21, %v75_v31 }
  0xa1   :  { %1617 = vmatmul.mubr.msk.f32.gmra.mrb[6].mxu1 %vm79_vm3, %v2072_v23 }
  0xa2   :  { %231 = vmatprep.mubr.f32.mxu1 %v2070_v5  ;;  %1735 = vmatpush1.bf16.msra.mxu1 %v2234_v18 }
  0xa3   :  { %1849 = vmatprep.subr.bf16.mxu1 %v2175_v41  ;;  %v2254_v32 = vpop.permute.xlu0 %274 }
  0xa4   :  { %v278_v33 = vsel %vm277_vm7, %v2161_v30, %v2254_v32 }
  0xa5   :  { %1618 = vmatmul.mubr.msk.f32.gmra.mrb[8].mxu1 %vm80_vm4, %v2072_v23 }
  0xa6   :  { %237 = vmatprep.mubr.f32.mxu1 %v2070_v5 }
  0xa9   :  { %1619 = vmatmul.mubr.msk.f32.gmra.mrb[10].mxu1 %vm81_vm5, %v2072_v23 }
  0xaa   :  { %243 = vmatprep.mubr.f32.mxu1 %v2070_v5 }
  0xad   :  { %1620 = vmatmul.mubr.msk.f32.gmra.mrb[12].mxu1 %vm82_vm6, %v2072_v23 }
  0xae   :  { %249 = vmatprep.mubr.f32.mxu1 %v2070_v5 }
  0xb1   :  { %1621 = vmatmul.mubr.msk.f32.gmra.mrb[14].mxu1 %vm83_vm8, %v2072_v23  ;;  %v2317_v23 = vrot.slane %v100_v36, %v140_v22 }
  0xb2   :  { %347 = vmatprep.mubr.f32.mxu1 %v2070_v5 }
  0xb5   :  { %1622 = vmatmul.mubr.msk.f32.vlgmr.msra.gmra.mrb[0].mxu1 %vm279_vm9, %v278_v33 }
  0xb6   :  { %1851 = vmatpush1.bf16.msra.mxu1 %v2183_v48  ;;  %1397 = vmatprep.mubr.f32.mxu1 %v2070_v5 }
  0xb7   :  { %1853 = vmatprep.subr.bf16.mxu1 %v2187_v50 }
  0xba   :  { %1855 = vmatpush1.bf16.msra.mxu1 %v2204_v60 }
  0xbb   :  { %1857 = vmatprep.subr.bf16.mxu1 %v2206_v62 }
  0xbe   :  { %1859 = vmatpush1.bf16.msra.mxu1 %v2222_v8 }
  0xbf   :  { %1861 = vmatprep.subr.bf16.mxu1 %v2224_v11 }
  0xc2   :  { %1863 = vmatpush1.bf16.msra.mxu1 %v2234_v18 }
 0x16c   :  { %v215_v38 = vpop.f32.mrb[2].mxu1 }
 0x16d   :  { %v216_v39 = vadd.f32 %v215_v38, %v137_v37  ;;  %v217_v40 = vpop.f32.mrb[3].mxu1 }
 0x16e   :  { %v218_v24 = vadd.f32 %v217_v40, %v2317_v23 }
 0x170   :  { %v221_v42 = vpop.f32.mrb[4].mxu1 }
 0x171   :  { %v2275_v43 = vadd.f32 %v221_v42, %v137_v37  ;;  %v2277_v44 = vpop.f32.mrb[5].mxu1 }
 0x174   :  { %v227_v45 = vpop.f32.mrb[6].mxu1 }
 0x175   :  { %v2279_v46 = vadd.f32 %v227_v45, %v137_v37  ;;  %v2281_v47 = vpop.f32.mrb[7].mxu1 }
 0x178   :  { %v233_v49 = vpop.f32.mrb[8].mxu1 }
 0x179   :  { %v2283_v51 = vadd.f32 %v233_v49, %v137_v37  ;;  %v2285_v52 = vpop.f32.mrb[9].mxu1 }
 0x17c   :  { %v239_v53 = vpop.f32.mrb[10].mxu1 }
 0x17d   :  { %v2287_v54 = vadd.f32 %v239_v53, %v137_v37  ;;  %v2289_v55 = vpop.f32.mrb[11].mxu1 }
 0x180   :  { %v245_v56 = vpop.f32.mrb[12].mxu1 }
 0x181   :  { %v2291_v57 = vadd.f32 %v245_v56, %v137_v37  ;;  %v2293_v58 = vpop.f32.mrb[13].mxu1 }
 0x184   :  { %v251_v59 = vpop.f32.mrb[14].mxu1 }
 0x185   :  { %v2295_v61 = vadd.f32 %v251_v59, %v137_v37  ;;  %v2297_v63 = vpop.f32.mrb[15].mxu1 }
 0x188   :  { %v349_v0 = vpop.f32.mrb[0].mxu1 }
 0x189   :  { %v1872_v1 = vadd.f32 %v349_v0, %v137_v37  ;;  %v351_v2 = vpop.f32.mrb[1].mxu1 }
 0x18b   :  { %1914 = vtanh.f32 %v1872_v1  ;;  %v1623_v4 = vmul.f32 -1.442695, %v1872_v1 }
 0x18d   :  { %1916 = vpow2.f32 %v1623_v4 }
 0x195   :  { %v1915_v3 = vpop.eup %1914 }
 0x196   :  { %362 = vrot.lane.b32.xlu1 %v1915_v3, %s2073_s2 }
 0x197   :  { %v1917_v6 = vpop.eup %1916 }
 0x198   :  { %v356_v7 = vadd.f32 1.0, %v1917_v6 }
 0x19a   :  { %1918 = vrcp.f32 %v356_v7 }
 0x1a4   :  { %v1919_v9 = vpop.eup %1918 }
 0x1a5   :  { %v360_v13 = vmul.f32 %v1919_v9, %v2161_v30 }
 0x208   :  { %v363_v10 = vpop.permute.xlu1 %362 }
 0x209   :  { %v365_v12 = vmul.f32 %v1919_v9, %v363_v10 }
 0x20b   :  { %367 = vrot.lane.b32.xlu0 %v365_v12, %s2073_s2 }
 0x27d   :  { %v368_v14 = vpop.permute.xlu0 %367 }
 0x27e   :  { %v370_v15 = vadd.f32 %v368_v14, %v360_v13 }
 0x280   :  { %1920 = vtanh.f32 %v370_v15 }
 0x28a   :  { %v1921_v16 = vpop.eup %1920 }
 0x28b   :  { %373 = vrot.lane.b32.xlu1 %v1921_v16, %s2073_s2 }
 0x2fd   :  { %v374_v17 = vpop.permute.xlu1 %373 }
 0x2fe   :  { %v376_v19 = vmul.f32 %v1919_v9, %v374_v17 }
 0x300   :  { %378 = vrot.lane.b32.xlu0 %v376_v19, %s2074_s21 }
 0x372   :  { %v379_v20 = vpop.permute.xlu0 %378 }
 0x373   :  { %v381_v21 = vsel %vm277_vm7, %v379_v20, %v2254_v32 }
 0x374   :  { %1624 = vmatmul.mubr.msk.f32.vlgmr.msra.gmra.mrb[0].mxu0 %vm279_vm9, %v381_v21 }
 0x375   :  { %1755 = vmatpush1.bf16.msra.mxu0 %v2183_v48  ;;  %587 = vmatprep.mubr.f32.mxu0 %v2070_v5 }
 0x376   :  { %1757 = vmatprep.subr.bf16.mxu0 %v2187_v50 }
 0x379   :  { %1759 = vmatpush1.bf16.msra.mxu0 %v2204_v60 }
 0x37a   :  { %1761 = vmatprep.subr.bf16.mxu0 %v2206_v62 }
 0x37d   :  { %1763 = vmatpush1.bf16.msra.mxu0 %v2222_v8 }
 0x37e   :  { %1765 = vmatprep.subr.bf16.mxu0 %v2224_v11 }
 0x381   :  { %1767 = vmatpush1.bf16.msra.mxu0 %v2234_v18 }
 0x382   :  { %1769 = vmatprep.subr.bf16.mxu0 %v2175_v41 }
 0x447   :  { %v451_v25 = vpop.f32.mrb[0].mxu0 }
 0x448   :  { %v452_v26 = vadd.f32 %v451_v25, %v216_v39  ;;  %v453_v27 = vpop.f32.mrb[1].mxu0 }
 0x449   :  { %v454_v28 = vadd.f32 %v453_v27, %v218_v24 }
 0x44a   :  { %1922 = vtanh.f32 %v452_v26  ;;  %v1625_v32 = vmul.f32 -1.442695, %v452_v26 }
 0x44b   :  { %1924 = vtanh.f32 %v454_v28  ;;  %v1626_v33 = vmul.f32 -1.442695, %v454_v28 }
 0x44c   :  { %1926 = vpow2.f32 %v1625_v32 }
 0x44d   :  { %1928 = vpow2.f32 %v1626_v33 }
 0x454   :  { %v1923_v29 = vpop.eup %1922 }
 0x455   :  { %v1925_v31 = vpop.eup %1924  ;;  %465 = vrot.lane.b32.xlu1 %v1923_v29, %s2073_s2 }
 0x456   :  { %492 = vrot.lane.b32.xlu0 %v1925_v31, %s2073_s2  ;;  %v1927_v34 = vpop.eup %1926 }
 0x457   :  { %v1929_v35 = vpop.eup %1928  ;;  %v459_v36 = vadd.f32 1.0, %v1927_v34 }
 0x458   :  { %v483_v37 = vadd.f32 1.0, %v1929_v35 }
 0x459   :  { %487 = vrot.lane.b32.xlu1 %v2161_v30, %s2074_s21  ;;  %1930 = vrcp.f32 %v459_v36 }
 0x45a   :  { %1932 = vrcp.f32 %v483_v37 }
 0x463   :  { %v1931_v38 = vpop.eup %1930 }
 0x464   :  { %v1933_v40 = vpop.eup %1932  ;;  %v463_v53 = vmul.f32 %v1931_v38, %v370_v15  ;;  %v224_v15 = vadd.f32 %v2277_v44, %v2317_v23 }
 0x4c7   :  { %v466_v39 = vpop.permute.xlu1 %465 }
 0x4c8   :  { %v468_v42 = vmul.f32 %v1931_v38, %v466_v39  ;;  %v493_v45 = vpop.permute.xlu0 %492 }
 0x4c9   :  { %v495_v49 = vmul.f32 %v1933_v40, %v493_v45 }
 0x4ca   :  { %470 = vrot.lane.b32.xlu0 %v468_v42, %s2073_s2 }
 0x4cb   :  { %497 = vrot.lane.b32.xlu1 %v495_v49, %s2073_s2  ;;  %v488_v30 = vpop.permute.xlu1 %487 }
 0x4cc   :  { %v490_v56 = vmul.f32 %v1933_v40, %v488_v30 }
 0x53c   :  { %v471_v59 = vpop.permute.xlu0 %470 }
 0x53d   :  { %v473_v0 = vadd.f32 %v471_v59, %v463_v53  ;;  %v498_v1 = vpop.permute.xlu1 %497 }
 0x53e   :  { %v500_v2 = vadd.f32 %v498_v1, %v490_v56 }
 0x53f   :  { %1934 = vtanh.f32 %v473_v0 }
 0x540   :  { %1936 = vtanh.f32 %v500_v2 }
 0x549   :  { %v1935_v3 = vpop.eup %1934 }
 0x54a   :  { %v1937_v4 = vpop.eup %1936  ;;  %476 = vrot.lane.b32.xlu0 %v1935_v3, %s2073_s2 }
 0x54b   :  { %503 = vrot.lane.b32.xlu1 %v1937_v4, %s2073_s2 }
 0x5bc   :  { %v477_v6 = vpop.permute.xlu0 %476 }
 0x5bd   :  { %v479_v7 = vmul.f32 %v1931_v38, %v477_v6  ;;  %v504_v9 = vpop.permute.xlu1 %503 }
 0x5be   :  { %v2328_v10 = vmul.f32 %v1933_v40, %v504_v9 }
 0x5bf   :  { %513 = vrot.lane.b32.xlu0 %v479_v7, %s2074_s21 }
 0x5c0   :  { %516 = vrot.lane.b32.xlu1 %v2328_v10, %s2071_s24 }
 0x631   :  { %v514_v12 = vpop.permute.xlu0 %513 }
 0x632   :  { %v517_v13 = vpop.permute.xlu1 %516 }
 0x633   :  { %v519_v14 = vsel %vm277_vm7, %v514_v12, %v517_v13 }
 0x634   :  { %1627 = vmatmul.mubr.msk.f32.vlgmr.msra.gmra.mrb[2].mxu0 %vm279_vm9, %v519_v14 }
 0x635   :  { %1771 = vmatpush1.bf16.msra.mxu0 %v2183_v48  ;;  %722 = vmatprep.mubr.f32.mxu0 %v2070_v5 }
 0x636   :  { %1773 = vmatprep.subr.bf16.mxu0 %v2187_v50 }
 0x639   :  { %1775 = vmatpush1.bf16.msra.mxu0 %v2204_v60 }
 0x63a   :  { %1777 = vmatprep.subr.bf16.mxu0 %v2206_v62 }
 0x63d   :  { %1779 = vmatpush1.bf16.msra.mxu0 %v2222_v8 }
 0x63e   :  { %1781 = vmatprep.subr.bf16.mxu0 %v2224_v11 }
 0x641   :  { %1783 = vmatpush1.bf16.msra.mxu0 %v2234_v18 }
 0x642   :  { %1785 = vmatprep.subr.bf16.mxu0 %v2175_v41 }
 0x707   :  { %v589_v16 = vpop.f32.mrb[2].mxu0 }
 0x708   :  { %v590_v17 = vadd.f32 %v589_v16, %v2275_v43  ;;  %v591_v19 = vpop.f32.mrb[3].mxu0 }
 0x709   :  { %v592_v20 = vadd.f32 %v591_v19, %v224_v15 }
 0x70a   :  { %1938 = vtanh.f32 %v590_v17  ;;  %v1628_v24 = vmul.f32 -1.442695, %v590_v17 }
 0x70b   :  { %1940 = vtanh.f32 %v592_v20  ;;  %v1629_v25 = vmul.f32 -1.442695, %v592_v20 }
 0x70c   :  { %1942 = vpow2.f32 %v1628_v24 }
 0x70d   :  { %1944 = vpow2.f32 %v1629_v25 }
 0x714   :  { %v1939_v21 = vpop.eup %1938 }
 0x715   :  { %v1941_v22 = vpop.eup %1940  ;;  %603 = vrot.lane.b32.xlu0 %v1939_v21, %s2073_s2 }
 0x716   :  { %627 = vrot.lane.b32.xlu1 %v1941_v22, %s2073_s2  ;;  %v1943_v26 = vpop.eup %1942 }
 0x717   :  { %v1945_v27 = vpop.eup %1944  ;;  %v597_v44 = vadd.f32 1.0, %v1943_v26 }
 0x718   :  { %v621_v28 = vadd.f32 1.0, %v1945_v27 }
 0x719   :  { %1946 = vrcp.f32 %v597_v44 }
 0x71a   :  { %1948 = vrcp.f32 %v621_v28 }
 0x723   :  { %v1947_v43 = vpop.eup %1946 }
 0x724   :  { %v1949_v31 = vpop.eup %1948  ;;  %v601_v35 = vmul.f32 %v1947_v43, %v473_v0 }
 0x725   :  { %v625_v37 = vmul.f32 %v1949_v31, %v500_v2  ;;  %v230_v2 = vadd.f32 %v2281_v47, %v2317_v23 }
 0x787   :  { %v604_v29 = vpop.permute.xlu0 %603 }
 0x788   :  { %v606_v32 = vmul.f32 %v1947_v43, %v604_v29  ;;  %v628_v33 = vpop.permute.xlu1 %627 }
 0x789   :  { %v630_v34 = vmul.f32 %v1949_v31, %v628_v33 }
 0x78a   :  { %608 = vrot.lane.b32.xlu0 %v606_v32, %s2073_s2 }
 0x78b   :  { %632 = vrot.lane.b32.xlu1 %v630_v34, %s2073_s2 }
 0x7fc   :  { %v609_v36 = vpop.permute.xlu0 %608 }
 0x7fd   :  { %v611_v38 = vadd.f32 %v609_v36, %v601_v35  ;;  %v633_v39 = vpop.permute.xlu1 %632 }
 0x7fe   :  { %v635_v40 = vadd.f32 %v633_v39, %v625_v37  ;;  %v236_v39 = vadd.f32 %v2285_v52, %v2317_v23 }
 0x7ff   :  { %1950 = vtanh.f32 %v611_v38 }
 0x800   :  { %1952 = vtanh.f32 %v635_v40 }
 0x809   :  { %v1951_v42 = vpop.eup %1950 }
 0x80a   :  { %v1953_v45 = vpop.eup %1952  ;;  %614 = vrot.lane.b32.xlu0 %v1951_v42, %s2073_s2 }
 0x80b   :  { %638 = vrot.lane.b32.xlu1 %v1953_v45, %s2073_s2 }
 0x87c   :  { %v615_v49 = vpop.permute.xlu0 %614 }
 0x87d   :  { %v617_v30 = vmul.f32 %v1947_v43, %v615_v49  ;;  %v639_v53 = vpop.permute.xlu1 %638 }
 0x87e   :  { %v2353_v56 = vmul.f32 %v1949_v31, %v639_v53 }
 0x87f   :  { %648 = vrot.lane.b32.xlu0 %v617_v30, %s2074_s21 }
 0x880   :  { %651 = vrot.lane.b32.xlu1 %v2353_v56, %s2071_s24 }
 0x8f1   :  { %v649_v59 = vpop.permute.xlu0 %648 }
 0x8f2   :  { %v652_v0 = vpop.permute.xlu1 %651 }
 0x8f3   :  { %v654_v1 = vsel %vm277_vm7, %v649_v59, %v652_v0 }
 0x8f4   :  { %1630 = vmatmul.mubr.msk.f32.vlgmr.msra.gmra.mrb[4].mxu0 %vm279_vm9, %v654_v1 }
 0x8f5   :  { %1787 = vmatpush1.bf16.msra.mxu0 %v2183_v48  ;;  %857 = vmatprep.mubr.f32.mxu0 %v2070_v5 }
 0x8f6   :  { %1789 = vmatprep.subr.bf16.mxu0 %v2187_v50 }
 0x8f9   :  { %1791 = vmatpush1.bf16.msra.mxu0 %v2204_v60 }
 0x8fa   :  { %1793 = vmatprep.subr.bf16.mxu0 %v2206_v62 }
 0x8fd   :  { %1795 = vmatpush1.bf16.msra.mxu0 %v2222_v8 }
 0x8fe   :  { %1797 = vmatprep.subr.bf16.mxu0 %v2224_v11 }
 0x901   :  { %1799 = vmatpush1.bf16.msra.mxu0 %v2234_v18 }
 0x902   :  { %1801 = vmatprep.subr.bf16.mxu0 %v2175_v41 }
 0x9c7   :  { %v724_v3 = vpop.f32.mrb[4].mxu0 }
 0x9c8   :  { %v725_v4 = vadd.f32 %v724_v3, %v2279_v46  ;;  %v726_v6 = vpop.f32.mrb[5].mxu0 }
 0x9c9   :  { %v727_v7 = vadd.f32 %v726_v6, %v230_v2 }
 0x9ca   :  { %1954 = vtanh.f32 %v725_v4  ;;  %v1631_v13 = vmul.f32 -1.442695, %v725_v4 }
 0x9cb   :  { %1956 = vtanh.f32 %v727_v7  ;;  %v1632_v14 = vmul.f32 -1.442695, %v727_v7 }
 0x9cc   :  { %1958 = vpow2.f32 %v1631_v13 }
 0x9cd   :  { %1960 = vpow2.f32 %v1632_v14 }
 0x9d4   :  { %v1955_v9 = vpop.eup %1954 }
 0x9d5   :  { %v1957_v12 = vpop.eup %1956  ;;  %738 = vrot.lane.b32.xlu0 %v1955_v9, %s2073_s2 }
 0x9d6   :  { %762 = vrot.lane.b32.xlu1 %v1957_v12, %s2073_s2  ;;  %v1959_v15 = vpop.eup %1958 }
 0x9d7   :  { %v1961_v16 = vpop.eup %1960  ;;  %v732_v47 = vadd.f32 1.0, %v1959_v15 }
 0x9d8   :  { %v756_v17 = vadd.f32 1.0, %v1961_v16 }
 0x9d9   :  { %1962 = vrcp.f32 %v732_v47 }
 0x9da   :  { %1964 = vrcp.f32 %v756_v17 }
 0x9e3   :  { %v1963_v46 = vpop.eup %1962 }
 0x9e4   :  { %v1965_v20 = vpop.eup %1964  ;;  %v736_v25 = vmul.f32 %v1963_v46, %v611_v38 }
 0x9e5   :  { %v760_v27 = vmul.f32 %v1965_v20, %v635_v40 }
 0xa47   :  { %v739_v19 = vpop.permute.xlu0 %738 }
 0xa48   :  { %v741_v21 = vmul.f32 %v1963_v46, %v739_v19  ;;  %v763_v22 = vpop.permute.xlu1 %762 }
 0xa49   :  { %v765_v24 = vmul.f32 %v1965_v20, %v763_v22 }
 0xa4a   :  { %743 = vrot.lane.b32.xlu0 %v741_v21, %s2073_s2 }
 0xa4b   :  { %767 = vrot.lane.b32.xlu1 %v765_v24, %s2073_s2 }
 0xabc   :  { %v744_v26 = vpop.permute.xlu0 %743 }
 0xabd   :  { %v746_v44 = vadd.f32 %v744_v26, %v736_v25  ;;  %v768_v28 = vpop.permute.xlu1 %767 }
 0xabe   :  { %v770_v43 = vadd.f32 %v768_v28, %v760_v27 }
 0xabf   :  { %1966 = vtanh.f32 %v746_v44 }
 0xac0   :  { %1968 = vtanh.f32 %v770_v43 }
 0xac9   :  { %v1967_v29 = vpop.eup %1966 }
 0xaca   :  { %v1969_v31 = vpop.eup %1968  ;;  %749 = vrot.lane.b32.xlu0 %v1967_v29, %s2073_s2 }
 0xacb   :  { %773 = vrot.lane.b32.xlu1 %v1969_v31, %s2073_s2 }
 0xb3c   :  { %v750_v32 = vpop.permute.xlu0 %749 }
 0xb3d   :  { %v752_v33 = vmul.f32 %v1963_v46, %v750_v32  ;;  %v774_v34 = vpop.permute.xlu1 %773 }
 0xb3e   :  { %v2378_v35 = vmul.f32 %v1965_v20, %v774_v34 }
 0xb3f   :  { %783 = vrot.lane.b32.xlu0 %v752_v33, %s2074_s21 }
 0xb40   :  { %786 = vrot.lane.b32.xlu1 %v2378_v35, %s2071_s24 }
 0xbb1   :  { %v784_v36 = vpop.permute.xlu0 %783 }
 0xbb2   :  { %v787_v37 = vpop.permute.xlu1 %786 }
 0xbb3   :  { %v789_v38 = vsel %vm277_vm7, %v784_v36, %v787_v37 }
 0xbb4   :  { %1633 = vmatmul.mubr.msk.f32.vlgmr.msra.gmra.mrb[6].mxu0 %vm279_vm9, %v789_v38 }
 0xbb5   :  { %1803 = vmatpush1.bf16.msra.mxu0 %v2183_v48  ;;  %992 = vmatprep.mubr.f32.mxu0 %v2070_v5 }
 0xbb6   :  { %1805 = vmatprep.subr.bf16.mxu0 %v2187_v50 }
 0xbb9   :  { %1807 = vmatpush1.bf16.msra.mxu0 %v2204_v60 }
 0xbba   :  { %1809 = vmatprep.subr.bf16.mxu0 %v2206_v62 }
 0xbbd   :  { %1811 = vmatpush1.bf16.msra.mxu0 %v2222_v8 }
 0xbbe   :  { %1813 = vmatprep.subr.bf16.mxu0 %v2224_v11 }
 0xbc1   :  { %1815 = vmatpush1.bf16.msra.mxu0 %v2234_v18 }
 0xbc2   :  { %1817 = vmatprep.subr.bf16.mxu0 %v2175_v41 }
 0xc87   :  { %v859_v40 = vpop.f32.mrb[6].mxu0 }
 0xc88   :  { %v860_v42 = vadd.f32 %v859_v40, %v2283_v51  ;;  %v861_v45 = vpop.f32.mrb[7].mxu0 }
 0xc89   :  { %v862_v49 = vadd.f32 %v861_v45, %v236_v39 }
 0xc8a   :  { %1970 = vtanh.f32 %v860_v42  ;;  %v1634_v59 = vmul.f32 -1.442695, %v860_v42 }
 0xc8b   :  { %1972 = vtanh.f32 %v862_v49  ;;  %v1635_v0 = vmul.f32 -1.442695, %v862_v49 }
 0xc8c   :  { %1974 = vpow2.f32 %v1634_v59 }
 0xc8d   :  { %1976 = vpow2.f32 %v1635_v0 }
 0xc94   :  { %v1971_v30 = vpop.eup %1970 }
 0xc95   :  { %v1973_v53 = vpop.eup %1972  ;;  %873 = vrot.lane.b32.xlu0 %v1971_v30, %s2073_s2 }
 0xc96   :  { %897 = vrot.lane.b32.xlu1 %v1973_v53, %s2073_s2  ;;  %v1975_v1 = vpop.eup %1974 }
 0xc97   :  { %v1977_v2 = vpop.eup %1976  ;;  %v867_v52 = vadd.f32 1.0, %v1975_v1 }
 0xc98   :  { %v891_v3 = vadd.f32 1.0, %v1977_v2 }
 0xc99   :  { %1978 = vrcp.f32 %v867_v52 }
 0xc9a   :  { %1980 = vrcp.f32 %v891_v3 }
 0xca3   :  { %v1979_v51 = vpop.eup %1978 }
 0xca4   :  { %v1981_v6 = vpop.eup %1980  ;;  %v871_v13 = vmul.f32 %v1979_v51, %v746_v44  ;;  %v242_v44 = vadd.f32 %v2289_v55, %v2317_v23 }
 0xca5   :  { %v895_v15 = vmul.f32 %v1981_v6, %v770_v43 }
 0xd07   :  { %v874_v4 = vpop.permute.xlu0 %873 }
 0xd08   :  { %v876_v7 = vmul.f32 %v1979_v51, %v874_v4  ;;  %v898_v9 = vpop.permute.xlu1 %897 }
 0xd09   :  { %v900_v12 = vmul.f32 %v1981_v6, %v898_v9 }
 0xd0a   :  { %878 = vrot.lane.b32.xlu0 %v876_v7, %s2073_s2 }
 0xd0b   :  { %902 = vrot.lane.b32.xlu1 %v900_v12, %s2073_s2 }
 0xd7c   :  { %v879_v14 = vpop.permute.xlu0 %878 }
 0xd7d   :  { %v881_v16 = vadd.f32 %v879_v14, %v871_v13  ;;  %v903_v47 = vpop.permute.xlu1 %902  ;;  %v248_v14 = vadd.f32 %v2293_v58, %v2317_v23 }
 0xd7e   :  { %v905_v17 = vadd.f32 %v903_v47, %v895_v15 }
 0xd7f   :  { %1982 = vtanh.f32 %v881_v16 }
 0xd80   :  { %1984 = vtanh.f32 %v905_v17 }
 0xd89   :  { %v1983_v46 = vpop.eup %1982 }
 0xd8a   :  { %v1985_v19 = vpop.eup %1984  ;;  %884 = vrot.lane.b32.xlu0 %v1983_v46, %s2073_s2 }
 0xd8b   :  { %908 = vrot.lane.b32.xlu1 %v1985_v19, %s2073_s2 }
 0xdfc   :  { %v885_v20 = vpop.permute.xlu0 %884 }
 0xdfd   :  { %v887_v21 = vmul.f32 %v1979_v51, %v885_v20  ;;  %v909_v22 = vpop.permute.xlu1 %908 }
 0xdfe   :  { %v2403_v24 = vmul.f32 %v1981_v6, %v909_v22 }
 0xdff   :  { %918 = vrot.lane.b32.xlu0 %v887_v21, %s2074_s21 }
 0xe00   :  { %921 = vrot.lane.b32.xlu1 %v2403_v24, %s2071_s24 }
 0xe71   :  { %v919_v25 = vpop.permute.xlu0 %918 }
 0xe72   :  { %v922_v26 = vpop.permute.xlu1 %921 }
 0xe73   :  { %v924_v27 = vsel %vm277_vm7, %v919_v25, %v922_v26 }
 0xe74   :  { %1636 = vmatmul.mubr.msk.f32.vlgmr.msra.gmra.mrb[8].mxu0 %vm279_vm9, %v924_v27 }
 0xe75   :  { %1819 = vmatpush1.bf16.msra.mxu0 %v2183_v48  ;;  %1127 = vmatprep.mubr.f32.mxu0 %v2070_v5 }
 0xe76   :  { %1821 = vmatprep.subr.bf16.mxu0 %v2187_v50 }
 0xe79   :  { %1823 = vmatpush1.bf16.msra.mxu0 %v2204_v60 }
 0xe7a   :  { %1825 = vmatprep.subr.bf16.mxu0 %v2206_v62 }
 0xe7d   :  { %1827 = vmatpush1.bf16.msra.mxu0 %v2222_v8 }
 0xe7e   :  { %1829 = vmatprep.subr.bf16.mxu0 %v2224_v11 }
 0xe81   :  { %1831 = vmatpush1.bf16.msra.mxu0 %v2234_v18 }
 0xe82   :  { %1833 = vmatprep.subr.bf16.mxu0 %v2175_v41 }
 0xf47   :  { %v994_v28 = vpop.f32.mrb[8].mxu0 }
 0xf48   :  { %v995_v43 = vadd.f32 %v994_v28, %v2287_v54  ;;  %v996_v29 = vpop.f32.mrb[9].mxu0 }
 0xf49   :  { %v997_v31 = vadd.f32 %v996_v29, %v242_v44 }
 0xf4a   :  { %1986 = vtanh.f32 %v995_v43  ;;  %v1637_v34 = vmul.f32 -1.442695, %v995_v43 }
 0xf4b   :  { %1988 = vtanh.f32 %v997_v31  ;;  %v1638_v36 = vmul.f32 -1.442695, %v997_v31 }
 0xf4c   :  { %1990 = vpow2.f32 %v1637_v34 }
 0xf4d   :  { %1992 = vpow2.f32 %v1638_v36 }
 0xf54   :  { %v1987_v32 = vpop.eup %1986 }
 0xf55   :  { %v1989_v33 = vpop.eup %1988  ;;  %1008 = vrot.lane.b32.xlu0 %v1987_v32, %s2073_s2 }
 0xf56   :  { %1032 = vrot.lane.b32.xlu1 %v1989_v33, %s2073_s2  ;;  %v1991_v41 = vpop.eup %1990 }
 0xf57   :  { %v1993_v37 = vpop.eup %1992  ;;  %v1002_v55 = vadd.f32 1.0, %v1991_v41 }
 0xf58   :  { %v1026_v38 = vadd.f32 1.0, %v1993_v37 }
 0xf59   :  { %1994 = vrcp.f32 %v1002_v55  ;;  %v254_v55 = vadd.f32 %v2297_v63, %v2317_v23 }
 0xf5a   :  { %1996 = vrcp.f32 %v1026_v38 }
 0xf63   :  { %v1995_v54 = vpop.eup %1994 }
 0xf64   :  { %v1997_v40 = vpop.eup %1996  ;;  %v1006_v30 = vmul.f32 %v1995_v54, %v881_v16 }
 0xf65   :  { %v1030_v59 = vmul.f32 %v1997_v40, %v905_v17 }
 0xfc7   :  { %v1009_v39 = vpop.permute.xlu0 %1008 }
 0xfc8   :  { %v1011_v42 = vmul.f32 %v1995_v54, %v1009_v39  ;;  %v1033_v45 = vpop.permute.xlu1 %1032 }
 0xfc9   :  { %v1035_v49 = vmul.f32 %v1997_v40, %v1033_v45 }
 0xfca   :  { %1013 = vrot.lane.b32.xlu0 %v1011_v42, %s2073_s2 }
 0xfcb   :  { %1037 = vrot.lane.b32.xlu1 %v1035_v49, %s2073_s2 }
0x103c   :  { %v1014_v53 = vpop.permute.xlu0 %1013 }
0x103d   :  { %v1016_v0 = vadd.f32 %v1014_v53, %v1006_v30  ;;  %v1038_v1 = vpop.permute.xlu1 %1037 }
0x103e   :  { %v1040_v2 = vadd.f32 %v1038_v1, %v1030_v59 }
0x103f   :  { %1998 = vtanh.f32 %v1016_v0 }
0x1040   :  { %2000 = vtanh.f32 %v1040_v2 }
0x1049   :  { %v1999_v52 = vpop.eup %1998 }
0x104a   :  { %v2001_v3 = vpop.eup %2000  ;;  %1019 = vrot.lane.b32.xlu0 %v1999_v52, %s2073_s2 }
0x104b   :  { %1043 = vrot.lane.b32.xlu1 %v2001_v3, %s2073_s2 }
0x10bc   :  { %v1020_v51 = vpop.permute.xlu0 %1019 }
0x10bd   :  { %v1022_v4 = vmul.f32 %v1995_v54, %v1020_v51  ;;  %v1044_v6 = vpop.permute.xlu1 %1043 }
0x10be   :  { %v2428_v7 = vmul.f32 %v1997_v40, %v1044_v6 }
0x10bf   :  { %1053 = vrot.lane.b32.xlu0 %v1022_v4, %s2074_s21 }
0x10c0   :  { %1056 = vrot.lane.b32.xlu1 %v2428_v7, %s2071_s24 }
0x1131   :  { %v1054_v9 = vpop.permute.xlu0 %1053 }
0x1132   :  { %v1057_v12 = vpop.permute.xlu1 %1056 }
0x1133   :  { %v1059_v13 = vsel %vm277_vm7, %v1054_v9, %v1057_v12 }
0x1134   :  { %1639 = vmatmul.mubr.msk.f32.vlgmr.msra.gmra.mrb[10].mxu0 %vm279_vm9, %v1059_v13 }
0x1135   :  { %1835 = vmatpush1.bf16.msra.mxu0 %v2183_v48  ;;  %1262 = vmatprep.mubr.f32.mxu0 %v2070_v5 }
0x1136   :  { %1837 = vmatprep.subr.bf16.mxu0 %v2187_v50 }
0x1139   :  { %1839 = vmatpush1.bf16.msra.mxu0 %v2204_v60 }
0x113a   :  { %1841 = vmatprep.subr.bf16.mxu0 %v2206_v62 }
0x113d   :  { %1843 = vmatpush1.bf16.msra.mxu0 %v2222_v8 }
0x113e   :  { %1845 = vmatprep.subr.bf16.mxu0 %v2224_v11 }
0x1141   :  { %1847 = vmatpush1.bf16.msra.mxu0 %v2234_v18 }
0x1207   :  { %v1129_v15 = vpop.f32.mrb[10].mxu0 }
0x1208   :  { %v1130_v48 = vadd.f32 %v1129_v15, %v2291_v57  ;;  %v1131_v16 = vpop.f32.mrb[11].mxu0 }
0x1209   :  { %v1132_v5 = vadd.f32 %v1131_v16, %v248_v14 }
0x120a   :  { %2002 = vtanh.f32 %v1130_v48  ;;  %v1640_v62 = vmul.f32 -1.442695, %v1130_v48 }
0x120b   :  { %2004 = vtanh.f32 %v1132_v5  ;;  %v1641_v8 = vmul.f32 -1.442695, %v1132_v5 }
0x120c   :  { %2006 = vpow2.f32 %v1640_v62 }
0x120d   :  { %2008 = vpow2.f32 %v1641_v8 }
0x1214   :  { %v2003_v50 = vpop.eup %2002 }
0x1215   :  { %v2005_v60 = vpop.eup %2004  ;;  %1143 = vrot.lane.b32.xlu0 %v2003_v50, %s2073_s2 }
0x1216   :  { %1167 = vrot.lane.b32.xlu1 %v2005_v60, %s2073_s2  ;;  %v2007_v11 = vpop.eup %2006 }
0x1217   :  { %v2009_v18 = vpop.eup %2008  ;;  %v1137_v58 = vadd.f32 1.0, %v2007_v11 }
0x1218   :  { %v1161_v47 = vadd.f32 1.0, %v2009_v18 }
0x1219   :  { %2010 = vrcp.f32 %v1137_v58 }
0x121a   :  { %2012 = vrcp.f32 %v1161_v47 }
0x1223   :  { %v2011_v57 = vpop.eup %2010 }
0x1224   :  { %v2013_v46 = vpop.eup %2012  ;;  %v1141_v22 = vmul.f32 %v2011_v57, %v1016_v0 }
0x1225   :  { %v1165_v26 = vmul.f32 %v2013_v46, %v1040_v2 }
0x1287   :  { %v1144_v17 = vpop.permute.xlu0 %1143 }
0x1288   :  { %v1146_v19 = vmul.f32 %v2011_v57, %v1144_v17  ;;  %v1168_v20 = vpop.permute.xlu1 %1167 }
0x1289   :  { %v1170_v21 = vmul.f32 %v2013_v46, %v1168_v20 }
0x128a   :  { %1148 = vrot.lane.b32.xlu0 %v1146_v19, %s2073_s2 }
0x128b   :  { %1172 = vrot.lane.b32.xlu1 %v1170_v21, %s2073_s2 }
0x12fc   :  { %v1149_v25 = vpop.permute.xlu0 %1148 }
0x12fd   :  { %v1151_v27 = vadd.f32 %v1149_v25, %v1141_v22  ;;  %v1173_v44 = vpop.permute.xlu1 %1172 }
0x12fe   :  { %v1175_v28 = vadd.f32 %v1173_v44, %v1165_v26  ;;  %v1441_v44 = vld [vmem:[%s2559_s4 + $0x8] sm:$0xff] }
0x12ff   :  { %2014 = vtanh.f32 %v1151_v27 }
0x1300   :  { %2016 = vtanh.f32 %v1175_v28 }
0x1309   :  { %v2015_v43 = vpop.eup %2014 }
0x130a   :  { %v2017_v29 = vpop.eup %2016  ;;  %1154 = vrot.lane.b32.xlu0 %v2015_v43, %s2073_s2 }
0x130b   :  { %1178 = vrot.lane.b32.xlu1 %v2017_v29, %s2073_s2 }
0x137c   :  { %v1155_v31 = vpop.permute.xlu0 %1154 }
0x137d   :  { %v1157_v32 = vmul.f32 %v2011_v57, %v1155_v31  ;;  %v1179_v33 = vpop.permute.xlu1 %1178 }
0x137e   :  { %v2452_v34 = vmul.f32 %v2013_v46, %v1179_v33 }
0x137f   :  { %1188 = vrot.lane.b32.xlu0 %v1157_v32, %s2074_s21 }
0x1380   :  { %1191 = vrot.lane.b32.xlu1 %v2452_v34, %s2071_s24 }
0x13f1   :  { %v1189_v36 = vpop.permute.xlu0 %1188 }
0x13f2   :  { %v1192_v41 = vpop.permute.xlu1 %1191 }
0x13f3   :  { %v1194_v37 = vsel %vm277_vm7, %v1189_v36, %v1192_v41 }
0x13f4   :  { %1642 = vmatmul.mubr.msk.f32.vlgmr.msra.gmra.mrb[12].mxu0 %vm279_vm9, %v1194_v37 }
0x14c7   :  { %v1264_v38 = vpop.f32.mrb[12].mxu0 }
0x14c8   :  { %v1265_v54 = vadd.f32 %v1264_v38, %v2295_v61  ;;  %v1266_v39 = vpop.f32.mrb[13].mxu0 }
0x14c9   :  { %v1267_v40 = vadd.f32 %v1266_v39, %v254_v55 }
0x14ca   :  { %2018 = vtanh.f32 %v1265_v54  ;;  %v1643_v49 = vmul.f32 -1.442695, %v1265_v54 }
0x14cb   :  { %2020 = vtanh.f32 %v1267_v40  ;;  %v1644_v30 = vmul.f32 -1.442695, %v1267_v40 }
0x14cc   :  { %2022 = vpow2.f32 %v1643_v49 }
0x14cd   :  { %2024 = vpow2.f32 %v1644_v30 }
0x14d4   :  { %v2019_v42 = vpop.eup %2018 }
0x14d5   :  { %v2021_v45 = vpop.eup %2020  ;;  %1278 = vrot.lane.b32.xlu0 %v2019_v42, %s2073_s2 }
0x14d6   :  { %1302 = vrot.lane.b32.xlu1 %v2021_v45, %s2073_s2  ;;  %v2023_v53 = vpop.eup %2022 }
0x14d7   :  { %v2025_v59 = vpop.eup %2024  ;;  %v1272_v63 = vadd.f32 1.0, %v2023_v53 }
0x14d8   :  { %v1296_v0 = vadd.f32 1.0, %v2025_v59 }
0x14d9   :  { %2026 = vrcp.f32 %v1272_v63 }
0x14da   :  { %2028 = vrcp.f32 %v1296_v0  ;;  %v1647_v0 = vld [vmem:[%s2560_s5] ss:$0 sm:$0xff] }
0x14e3   :  { %v2027_v61 = vpop.eup %2026 }
0x14e4   :  { %v2029_v2 = vpop.eup %2028  ;;  %v1276_v4 = vmul.f32 %v2027_v61, %v1151_v27  ;;  %v1440_v27 = vld [vmem:[%s2559_s4] sm:$0xff] }
0x14e5   :  { %v1300_v9 = vmul.f32 %v2029_v2, %v1175_v28  ;;  %v1443_v28 = vld [vmem:[%s2559_s4 + $0x18] sm:$0xff] }
0x1547   :  { %v1279_v1 = vpop.permute.xlu0 %1278 }
0x1548   :  { %v1281_v52 = vmul.f32 %v2027_v61, %v1279_v1  ;;  %v1303_v3 = vpop.permute.xlu1 %1302 }
0x1549   :  { %v1305_v51 = vmul.f32 %v2029_v2, %v1303_v3 }
0x154a   :  { %1283 = vrot.lane.b32.xlu0 %v1281_v52, %s2073_s2 }
0x154b   :  { %1307 = vrot.lane.b32.xlu1 %v1305_v51, %s2073_s2 }
0x15bc   :  { %v1284_v6 = vpop.permute.xlu0 %1283 }
0x15bd   :  { %v2466_v12 = vadd.f32 %v1284_v6, %v1276_v4  ;;  %v1308_v13 = vpop.permute.xlu1 %1307 }
0x15be   :  { %v1310_v14 = vadd.f32 %v1308_v13, %v1300_v9 }
0x15bf   :  { %2030 = vtanh.f32 %v2466_v12 }
0x15c0   :  { %2032 = vtanh.f32 %v1310_v14 }
0x15c9   :  { %v2031_v15 = vpop.eup %2030 }
0x15ca   :  { %v2033_v48 = vpop.eup %2032  ;;  %1289 = vrot.lane.b32.xlu0 %v2031_v15, %s2073_s2 }
0x15cb   :  { %1313 = vrot.lane.b32.xlu1 %v2033_v48, %s2073_s2 }
0x163c   :  { %v1290_v16 = vpop.permute.xlu0 %1289 }
0x163d   :  { %v1292_v5 = vmul.f32 %v2027_v61, %v1290_v16  ;;  %v1314_v50 = vpop.permute.xlu1 %1313 }
0x163e   :  { %v1316_v60 = vmul.f32 %v2029_v2, %v1314_v50 }
0x163f   :  { %1323 = vrot.lane.b32.xlu0 %v1292_v5, %s2074_s21 }
0x1640   :  { %1326 = vrot.lane.b32.xlu1 %v1316_v60, %s2071_s24 }
0x16b1   :  { %v1324_v62 = vpop.permute.xlu0 %1323 }
0x16b2   :  { %v1327_v8 = vpop.permute.xlu1 %1326  ;;  %v1592_v55 = vsel %vm277_vm7, %v1324_v62, %v2466_v12 }
0x16b3   :  { %v1329_v11 = vsel %vm277_vm7, %v1324_v62, %v1327_v8 }
0x16b4   :  { %1645 = vmatmul.mubr.msk.f32.vlgmr.msra.gmra.mrb[16].mxu1 %vm279_vm9, %v1329_v11 }
0x1787   :  { %v1399_v18 = vpop.f32.mrb[16].mxu1 }
0x1788   :  { %v1400_v58 = vpop.f32.mrb[17].mxu1 }
0x1789   :  { %v1401_v47 = vadd.f32 %v1400_v58, %v2317_v23 }
0x178b   :  { %2034 = vtanh.f32 %v1401_v47  ;;  %v1646_v17 = vmul.f32 -1.442695, %v1401_v47 }
0x178d   :  { %2036 = vpow2.f32 %v1646_v17 }
0x1795   :  { %v2035_v57 = vpop.eup %2034 }
0x1796   :  { %1412 = vrot.lane.b32.xlu0 %v2035_v57, %s2073_s2 }
0x1797   :  { %v2037_v46 = vpop.eup %2036 }
0x1798   :  { %v1406_v19 = vadd.f32 1.0, %v2037_v46 }
0x179a   :  { %2038 = vrcp.f32 %v1406_v19 }
0x17a4   :  { %v2039_v20 = vpop.eup %2038 }
0x17a5   :  { %v1410_v23 = vmul.f32 %v2039_v20, %v1310_v14 }
0x1808   :  { %v1413_v21 = vpop.permute.xlu0 %1412 }
0x1809   :  { %v1415_v22 = vmul.f32 %v2039_v20, %v1413_v21 }
0x180b   :  { %1417 = vrot.lane.b32.xlu1 %v1415_v22, %s2073_s2 }
0x180f   :  { %508 = vrot.lane.b32.xlu1 %v2328_v10, %s2074_s21  ;;  %v1864_v10 = vpack.c.bf16 %v1441_v44, %v1440_v27 }
0x1811   :  { %1865 = vmatprep.subr.bf16.mxu1 %v1864_v10 }
0x1812   :  { %1867 = vmatpush3.bf16.msra.mxu1 %v1864_v10 }
0x1813   :  { %778 = vrot.lane.b32.xlu1 %v2378_v35, %s2074_s21 }
0x1817   :  { %1048 = vrot.lane.b32.xlu1 %v2428_v7, %s2074_s21  ;;  %v1442_v7 = vld [vmem:[%s2559_s4 + $0x10] sm:$0xff] }
0x1818   :  { %v1868_v43 = vpack.c.bf16 %v1443_v28, %v1442_v7 }
0x181a   :  { %1869 = vmatprep.subr.bf16.mxu1 %v1868_v43 }
0x181b   :  { %1318 = vrot.lane.b32.xlu1 %v1316_v60, %s2074_s21  ;;  %1871 = vmatpush3.bf16.msra.mxu1 %v1868_v43 }
0x187d   :  { %v1418_v25 = vpop.permute.xlu1 %1417 }
0x187e   :  { %v1420_v26 = vadd.f32 %v1418_v25, %v1410_v23 }
0x1880   :  { %2040 = vtanh.f32 %v1420_v26  ;;  %1589 = vrot.lane.b32.xlu1 %v1420_v26, %s2074_s21 }
0x1881   :  { %v509_v35 = vpop.permute.xlu1 %508 }
0x1882   :  { %511 = vst.msk [vmem:[#allocation2] sm:$0xff] %vm277_vm7, %v509_v35 }
0x1885   :  { %v779_v29 = vpop.permute.xlu1 %778 }
0x1886   :  { %781 = vst.msk [vmem:[#allocation2 + $0x10] sm:$0xff] %vm277_vm7, %v779_v29 }
0x1889   :  { %v1049_v31 = vpop.permute.xlu1 %1048  ;;  %v1432_v32 = vld [vmem:[#allocation2] sm:$0xff] }
0x188a   :  { %v2041_v33 = vpop.eup %2040  ;;  %1051 = vst.msk [vmem:[#allocation2 + $0x20] sm:$0xff] %vm277_vm7, %v1049_v31  ;;  %1676 = vmatprep.mubr.msk.f32.mxu1 %vm277_vm7, %v1432_v32 }
0x188b   :  { %1423 = vrot.lane.b32.xlu0 %v2041_v33, %s2073_s2 }
0x188d   :  { %v1319_v36 = vpop.permute.xlu1 %1318  ;;  %v1434_v42 = vld [vmem:[#allocation2 + $0x10] sm:$0xff] }
0x188e   :  { %1321 = vst.msk [vmem:[#allocation2 + $0x30] sm:$0xff] %vm277_vm7, %v1319_v36 }
0x188f   :  { %643 = vrot.lane.b32.xlu0 %v2353_v56, %s2074_s21 }
0x1891   :  { %v1436_v49 = vld [vmem:[#allocation2 + $0x20] sm:$0xff] }
0x1893   :  { %913 = vrot.lane.b32.xlu0 %v2403_v24, %s2074_s21 }
0x1895   :  { %v1438_v53 = vld [vmem:[#allocation2 + $0x30] sm:$0xff] }
0x1897   :  { %1183 = vrot.lane.b32.xlu0 %v2452_v34, %s2074_s21 }
0x18f2   :  { %v1590_v38 = vpop.permute.xlu1 %1589 }
0x18fd   :  { %v1424_v41 = vpop.permute.xlu0 %1423 }
0x18fe   :  { %v1426_v37 = vmul.f32 %v2039_v20, %v1424_v41 }
0x1900   :  { %v1593_v54 = vsel %vm279_vm9, %v1592_v55, %v1426_v37  ;;  %1428 = vrot.lane.b32.xlu0 %v1426_v37, %s2074_s21 }
0x1901   :  { %v1595_v39 = vsel %vm1594_vm10, %v1593_v54, %v1590_v38  ;;  %v644_v40 = vpop.permute.xlu0 %643 }
0x1902   :  { %1596 = vst [vmem:[%s2563_s8] sm:$0xff] %v1595_v39  ;;  %646 = vst.msk [vmem:[#allocation2 + $0x8] sm:$0xff] %vm277_vm7, %v644_v40 }
0x1905   :  { %v914_v56 = vpop.permute.xlu0 %913 }
0x1906   :  { %916 = vst.msk [vmem:[#allocation2 + $0x18] sm:$0xff] %vm277_vm7, %v914_v56 }
0x1909   :  { %v1184_v24 = vpop.permute.xlu0 %1183  ;;  %v1433_v34 = vld [vmem:[#allocation2 + $0x8] sm:$0xff] }
0x190a   :  { %1186 = vst.msk [vmem:[#allocation2 + $0x28] sm:$0xff] %vm277_vm7, %v1184_v24  ;;  %1677 = vmatmul.mubr.msk.f32.vlgmr.msra.gmra.mrb[18].mxu1 %vm277_vm7, %v1433_v34 }
0x190b   :  { %1679 = vmatprep.mubr.msk.f32.mxu1 %vm277_vm7, %v1434_v42 }
0x190d   :  { %v1435_v45 = vld [vmem:[#allocation2 + $0x18] sm:$0xff] }
0x190e   :  { %1680 = vmatmul.mubr.msk.f32.gmra.mrb[20].mxu1 %vm277_vm7, %v1435_v45 }
0x190f   :  { %1682 = vmatprep.mubr.msk.f32.mxu1 %vm277_vm7, %v1436_v49 }
0x1911   :  { %v1437_v30 = vld [vmem:[#allocation2 + $0x28] sm:$0xff] }
0x1912   :  { %1683 = vmatmul.mubr.msk.f32.gmra.mrb[22].mxu1 %vm277_vm7, %v1437_v30 }
0x1913   :  { %1685 = vmatprep.mubr.msk.f32.mxu1 %vm277_vm7, %v1438_v53 }
0x1972   :  { %v1429_v59 = vpop.permute.xlu0 %1428 }
0x1973   :  { %1431 = vst.msk [vmem:[#allocation2 + $0x38] sm:$0xff] %vm277_vm7, %v1429_v59 }
0x197a   :  { %v1439_v63 = vld [vmem:[#allocation2 + $0x38] sm:$0xff] }
0x197b   :  { %1686 = vmatmul.mubr.msk.f32.gmra.mrb[24].mxu1 %vm277_vm7, %v1439_v63 }
0x19dd   :  { %v1678_v61 = vpop.f32.mrb[18].mxu1 }
0x19de   :  { %v1547_v1 = vadd.f32 %v1678_v61, %v1647_v0  ;;  %v1541_v2 = vpop.f32.mrb[19].mxu1 }
0x19df   :  { %v1542_v52 = vadd.f32 %v1647_v0, %v1541_v2 }
0x19e0   :  { %1581 = vst [vmem:[%s2562_s7 + $0x8] sm:$0xff] %v1547_v1 }
0x19e1   :  { %1580 = vst [vmem:[%s2562_s7] sm:$0xff] %v1542_v52  ;;  %v1681_v3 = vpop.f32.mrb[20].mxu1 }
0x19e2   :  { %v1557_v51 = vadd.f32 %v1681_v3, %v1647_v0  ;;  %v1551_v4 = vpop.f32.mrb[21].mxu1 }
0x19e3   :  { %v1552_v6 = vadd.f32 %v1647_v0, %v1551_v4 }
0x19e4   :  { %1583 = vst [vmem:[%s2562_s7 + $0x18] sm:$0xff] %v1557_v51 }
0x19e5   :  { %1582 = vst [vmem:[%s2562_s7 + $0x10] sm:$0xff] %v1552_v6  ;;  %v1684_v9 = vpop.f32.mrb[22].mxu1 }
0x19e6   :  { %v1567_v12 = vadd.f32 %v1684_v9, %v1647_v0  ;;  %v1561_v13 = vpop.f32.mrb[23].mxu1 }
0x19e7   :  { %v1562_v14 = vadd.f32 %v1647_v0, %v1561_v13 }
0x19e8   :  { %1585 = vst [vmem:[%s2562_s7 + $0x28] sm:$0xff] %v1567_v12 }
0x19e9   :  { %1584 = vst [vmem:[%s2562_s7 + $0x20] sm:$0xff] %v1562_v14 }
0x1a4e   :  { %v1687_v15 = vpop.f32.mrb[24].mxu1 }
0x1a4f   :  { %v1577_v48 = vadd.f32 %v1687_v15, %v1647_v0  ;;  %v1571_v16 = vpop.f32.mrb[25].mxu1 }
0x1a50   :  { %v1572_v5 = vadd.f32 %v1647_v0, %v1571_v16 }
0x1a51   :  { %1587 = vst [vmem:[%s2562_s7 + $0x38] sm:$0xff] %v1577_v48 }
0x1a52   :  { %1586 = vst [vmem:[%s2562_s7 + $0x30] sm:$0xff] %v1572_v5 }
0x1a53   :  { %1605 = vsyncpa [#allocation4], 1 }

</bundles_post_ra>
